<compile_context>
chip_gen: v7x
topology: tpu7x:2x2x1
jax: 0.10.0
libtpu: 0.0.40
codegen_flags: <defaults>
</compile_context>

<pallas_src>
import math
from functools import partial

import jax
import jax.numpy as jnp
from jax.experimental import pallas as pl
from jax.experimental.pallas import tpu as pltpu


# ----------------------------- in-kernel helpers -----------------------------

def _ln(x, g, b, eps=1e-12):
    mu = jnp.mean(x, axis=-1, keepdims=True)
    var = jnp.mean((x - mu) ** 2, axis=-1, keepdims=True)
    return (x - mu) * jax.lax.rsqrt(var + eps) * g + b


def _gelu(x):
    # TODO(synk): reference BERT uses erf-based GELU; tanh approximation here
    # (tiny numerical drift; erf lowering inside Mosaic is not guaranteed).
    return 0.5 * x * (1.0 + jnp.tanh(0.7978845608028654 * (x + 0.044715 * x * x * x)))


# ----------------------------- Pallas kernel ----------------------------------

def _bert_encoder_kernel(x_ref, mask_ref, eg_ref, eb_ref,
                         wqkv_ref, bqkv_ref, wo_ref, bo_ref,
                         ln1g_ref, ln1b_ref, w1_ref, b1_ref, w2_ref, b2_ref,
                         ln2g_ref, ln2b_ref,
                         h_ref, ctx_ref, *, B, S, nh, dh):
    """One grid step == one encoder layer; residual h stays resident in VMEM."""
    H = nh * dh

    # Layer 0: fused embedding LayerNorm initializes the resident activation.
    @pl.when(pl.program_id(0) == 0)
    def _():
        h_ref[...] = _ln(x_ref[...], eg_ref[...], eb_ref[...])

    x = h_ref[...]                                          # (M, H) f32 residual

    # Packed QKV projection: one MXU pass, bf16 operands, f32 accumulation.
    # (1/sqrt(dh) is folded into the Q columns of wqkv/bqkv at pack time.)
    qkv = jnp.dot(x.astype(jnp.bfloat16), wqkv_ref[...],
                  preferred_element_type=jnp.float32) + bqkv_ref[...]     # (M, 3H)
    qkv = qkv.reshape(B, S, 3 * H)                           # major-dim split only

    mask_bias = mask_ref[...]                                # (B, 1, S) additive

    # Attention: B-batched einsums, short static loop over heads.  Head contexts
    # are written lane-slab-wise into a VMEM scratch so the output projection is
    # a single (M,H)@(H,H) matmul with K=H.
    # TODO(synk): at real BERT sizes (nh=12) switch to a fully (B*nh)-batched
    # einsum or lax.fori_loop over heads to bound live ranges further.
    for h in range(nh):
        q_h = qkv[:, :, h * dh:(h + 1) * dh]                             # (B,S,dh)
        k_h = qkv[:, :, H + h * dh:H + (h + 1) * dh]
        v_h = qkv[:, :, 2 * H + h * dh:2 * H + (h + 1) * dh]
        s = jnp.einsum('bqd,bkd->bqk',
                       q_h.astype(jnp.bfloat16), k_h.astype(jnp.bfloat16),
                       preferred_element_type=jnp.float32) + mask_bias   # (B,S,S)
        s = s - jnp.max(s, axis=-1, keepdims=True)
        p = jnp.exp(s)
        p = p * pl.reciprocal(jnp.sum(p, axis=-1, keepdims=True), approx=True)
        ctx_h = jnp.einsum('bqk,bkd->bqd',
                           p.astype(jnp.bfloat16), v_h.astype(jnp.bfloat16),
                           preferred_element_type=jnp.float32)           # (B,S,dh)
        ctx_ref[:, :, h * dh:(h + 1) * dh] = ctx_h                       # slab store

    # Single output projection over the full hidden dim (contraction K = H).
    ctx = ctx_ref[...].reshape(B * S, H)
    attn_out = jnp.dot(ctx.astype(jnp.bfloat16), wo_ref[...],
                       preferred_element_type=jnp.float32) + bo_ref[...]

    # Residual + LayerNorm 1.
    h1 = _ln(attn_out + x, ln1g_ref[...], ln1b_ref[...])

    # FFN: H -> I -> GELU -> H, bf16 matmul operands, f32 accumulate.
    hi = jnp.dot(h1.astype(jnp.bfloat16), w1_ref[...],
                 preferred_element_type=jnp.float32) + b1_ref[...]
    hi = _gelu(hi)
    ffn_out = jnp.dot(hi.astype(jnp.bfloat16), w2_ref[...],
                      preferred_element_type=jnp.float32) + b2_ref[...]

    # Residual + LayerNorm 2 — new resident activation for the next layer step.
    h_ref[...] = _ln(ffn_out + h1, ln2g_ref[...], ln2b_ref[...])


def bert_encoder(emb, mask_bias, enc, *, B, S, nh, dh):
    """Run all encoder layers in one pallas_call with a layer grid axis."""
    M, H = emb.shape
    L = enc["wqkv"].shape[0]
    I = enc["w1"].shape[-1]
    kern = partial(_bert_encoder_kernel, B=B, S=S, nh=nh, dh=dh)

    fixed2 = lambda l: (0, 0)
    fixed3 = lambda l: (0, 0, 0)
    per_layer = lambda l: (l, 0, 0)

    # TODO(synk): at real BERT sizes (H=768, I=3072, S=512) add an M-tiled
    # (flash-style) grid axis marked "parallel" (v7x megacore) and pick tile_M
    # per chip (<=~512 on v7x's 64 MiB VMEM, ~1024 on v5e/v6e); at B*S=16 a
    # single M block fits trivially in VMEM.
    grid_spec = pltpu.PrefetchScalarGridSpec(
        num_scalar_prefetch=0,
        grid=(L,),
        in_specs=[
            pl.BlockSpec((M, H), fixed2),                  # embeddings (pre-LN)
            pl.BlockSpec((B, 1, S), fixed3),               # additive mask bias
            pl.BlockSpec((1, H), fixed2),                  # emb LN gamma
            pl.BlockSpec((1, H), fixed2),                  # emb LN beta
            pl.BlockSpec((None, H, 3 * H), per_layer),     # wqkv   (bf16)
            pl.BlockSpec((None, 1, 3 * H), per_layer),     # bqkv
            pl.BlockSpec((None, H, H), per_layer),         # wo     (bf16)
            pl.BlockSpec((None, 1, H), per_layer),         # bo
            pl.BlockSpec((None, 1, H), per_layer),         # ln1 gamma
            pl.BlockSpec((None, 1, H), per_layer),         # ln1 beta
            pl.BlockSpec((None, H, I), per_layer),         # w1     (bf16)
            pl.BlockSpec((None, 1, I), per_layer),         # b1
            pl.BlockSpec((None, I, H), per_layer),         # w2     (bf16)
            pl.BlockSpec((None, 1, H), per_layer),         # b2
            pl.BlockSpec((None, 1, H), per_layer),         # ln2 gamma
            pl.BlockSpec((None, 1, H), per_layer),         # ln2 beta
        ],
        out_specs=pl.BlockSpec((M, H), fixed2),            # resident residual h
        scratch_shapes=[pltpu.VMEM((B, S, H), jnp.float32)],   # head-context slab
    )
    return pl.pallas_call(
        kern,
        out_shape=jax.ShapeDtypeStruct((M, H), jnp.float32),
        grid_spec=grid_spec,
        compiler_params=pltpu.CompilerParams(
            dimension_semantics=("arbitrary",),
            vmem_limit_bytes=32 * 1024 * 1024),
    )(emb, mask_bias, enc["emb_ln_g"], enc["emb_ln_b"],
      enc["wqkv"], enc["bqkv"], enc["wo"], enc["bo"],
      enc["ln1_g"], enc["ln1_b"], enc["w1"], enc["b1"], enc["w2"], enc["b2"],
      enc["ln2_g"], enc["ln2_b"])


# ----------------------------- Parameters ------------------------------------

def init_params(key, *, vocab=100, hidden=32, layers=2, heads=2,
                intermediate=64, max_pos=16, type_vocab=2, num_classes=3):
    def nrm(k, shape, std=0.02):
        return std * jax.random.normal(k, shape, dtype=jnp.float32)

    keys = iter(jax.random.split(key, 8 + layers * 16))
    params = {
        "word_emb": nrm(next(keys), (vocab, hidden)),
        "pos_emb": nrm(next(keys), (max_pos, hidden)),
        "type_emb": nrm(next(keys), (type_vocab, hidden)),
        "emb_ln_g": jnp.ones((hidden,), jnp.float32),
        "emb_ln_b": jnp.zeros((hidden,), jnp.float32),
        "pool_w": nrm(next(keys), (hidden, hidden)),
        "pool_b": jnp.zeros((hidden,), jnp.float32),
        "fc_w": nrm(next(keys), (hidden, num_classes)),
        "fc_b": jnp.zeros((num_classes,), jnp.float32),
        "layers": [],
    }
    for _ in range(layers):
        params["layers"].append({
            "wq": nrm(next(keys), (hidden, hidden)), "bq": jnp.zeros((hidden,), jnp.float32),
            "wk": nrm(next(keys), (hidden, hidden)), "bk": jnp.zeros((hidden,), jnp.float32),
            "wv": nrm(next(keys), (hidden, hidden)), "bv": jnp.zeros((hidden,), jnp.float32),
            "wo": nrm(next(keys), (hidden, hidden)), "bo": jnp.zeros((hidden,), jnp.float32),
            "ln1_g": jnp.ones((hidden,), jnp.float32), "ln1_b": jnp.zeros((hidden,), jnp.float32),
            "w1": nrm(next(keys), (hidden, intermediate)), "b1": jnp.zeros((intermediate,), jnp.float32),
            "w2": nrm(next(keys), (intermediate, hidden)), "b2": jnp.zeros((hidden,), jnp.float32),
            "ln2_g": jnp.ones((hidden,), jnp.float32), "ln2_b": jnp.zeros((hidden,), jnp.float32),
        })
    params["_num_heads"] = heads
    return params


def pack_params(raw):
    """Pack QKV, fold 1/sqrt(dh) into Q, stack per-layer weights on a layer axis,
    cast matmul weights to bf16 (biases / LN params stay f32)."""
    H = raw["word_emb"].shape[1]
    nh = raw["_num_heads"]
    dh = H // nh
    scale = 1.0 / math.sqrt(dh)
    bf = lambda a: a.astype(jnp.bfloat16)
    layers = raw["layers"]
    I = layers[0]["w1"].shape[1]

    def stack(name, fn=lambda a: a):
        return jnp.stack([fn(L[name]) for L in layers], axis=0)

    wqkv = jnp.stack(
        [jnp.concatenate([L["wq"] * scale, L["wk"], L["wv"]], axis=1) for L in layers],
        axis=0)                                                          # (L, H, 3H)
    bqkv = jnp.stack(
        [jnp.concatenate([L["bq"] * scale, L["bk"], L["bv"]]).reshape(1, 3 * H)
         for L in layers], axis=0)                                       # (L, 1, 3H)

    return {
        "word_emb": raw["word_emb"], "pos_emb": raw["pos_emb"], "type_emb": raw["type_emb"],
        "pool_w": raw["pool_w"], "pool_b": raw["pool_b"],
        "fc_w": raw["fc_w"], "fc_b": raw["fc_b"],
        "_num_heads": nh,
        "enc": {
            "emb_ln_g": raw["emb_ln_g"].reshape(1, H),
            "emb_ln_b": raw["emb_ln_b"].reshape(1, H),
            "wqkv": bf(wqkv), "bqkv": bqkv,
            "wo": bf(stack("wo")), "bo": stack("bo", lambda a: a.reshape(1, H)),
            "ln1_g": stack("ln1_g", lambda a: a.reshape(1, H)),
            "ln1_b": stack("ln1_b", lambda a: a.reshape(1, H)),
            "w1": bf(stack("w1")), "b1": stack("b1", lambda a: a.reshape(1, I)),
            "w2": bf(stack("w2")), "b2": stack("b2", lambda a: a.reshape(1, H)),
            "ln2_g": stack("ln2_g", lambda a: a.reshape(1, H)),
            "ln2_b": stack("ln2_b", lambda a: a.reshape(1, H)),
        },
    }


# ----------------------------- Forward pass -----------------------------------

def model_forward(params, x):
    """x = [ids, seq_len, mask]  (ids:[B,S] int32, mask:[B,S] int32) -> logits [B,C]."""
    ids, _seq_len, mask = x
    B, S = ids.shape
    H = params["word_emb"].shape[1]
    nh = params["_num_heads"]
    dh = H // nh

    # Embeddings (token + position + segment[0]) — gathers stay in plain JAX glue.
    emb = (params["word_emb"][ids]
           + params["pos_emb"][jnp.arange(S)][None, :, :]
           + params["type_emb"][0][None, None, :])
    emb = emb.reshape(B * S, H)

    # Additive attention-mask bias (0 keep, -1e9 pad), shaped for key-broadcast.
    mask_bias = ((1.0 - mask.astype(jnp.float32)) * (-1e9)).reshape(B, 1, S)

    # Entire encoder stack (embedding LN fused in) as one layer-gridded kernel.
    h = bert_encoder(emb, mask_bias, params["enc"], B=B, S=S, nh=nh, dh=dh)

    # Pooler (tanh linear on [CLS]) + classifier head: tiny (B,H) matmuls — plain
    # XLA per perf review (kernel launch overhead would exceed the compute).
    cls = h.reshape(B, S, H)[:, 0, :]
    pooled = jnp.tanh(cls @ params["pool_w"] + params["pool_b"])
    logits = pooled @ params["fc_w"] + params["fc_b"]
    return logits


# ----------------------------------- Main --------------------------------------

if __name__ == "__main__":
    B, S = 2, 8
    NUM_CLASSES = 3

    key = jax.random.PRNGKey(0)
    kp, kid = jax.random.split(key)
    raw_params = init_params(kp, vocab=100, hidden=32, layers=2, heads=2,
                             intermediate=64, max_pos=16, num_classes=NUM_CLASSES)
    params = pack_params(raw_params)

    ids = jax.random.randint(kid, (B, S), 0, 100, dtype=jnp.int32)
    seq_len = jnp.array([S, S - 2], dtype=jnp.int32)
    # attention mask: second sequence has 2 padded positions
    mask = jnp.array([[1] * S, [1] * (S - 2) + [0, 0]], dtype=jnp.int32)

    out = model_forward(params, [ids, seq_len, mask])
    out = jax.block_until_ready(out)
    assert out.shape == (B, NUM_CLASSES)
    assert bool(jnp.all(jnp.isfinite(out)))
    print("KERNEL_OK")
</pallas_src>

<mosaic_0001>
module attributes {stable_mosaic.version = 11 : i64} {
  func.func @_bert_encoder_kernel(%arg0: i32, %arg1: memref<16x32xf32, #tpu.memory_space<vmem>>, %arg2: memref<2x1x8xf32, #tpu.memory_space<vmem>>, %arg3: memref<1x32xf32, #tpu.memory_space<vmem>>, %arg4: memref<1x32xf32, #tpu.memory_space<vmem>>, %arg5: memref<1x32x96xbf16, #tpu.memory_space<vmem>>, %arg6: memref<1x1x96xf32, #tpu.memory_space<vmem>>, %arg7: memref<1x32x32xbf16, #tpu.memory_space<vmem>>, %arg8: memref<1x1x32xf32, #tpu.memory_space<vmem>>, %arg9: memref<1x1x32xf32, #tpu.memory_space<vmem>>, %arg10: memref<1x1x32xf32, #tpu.memory_space<vmem>>, %arg11: memref<1x32x64xbf16, #tpu.memory_space<vmem>>, %arg12: memref<1x1x64xf32, #tpu.memory_space<vmem>>, %arg13: memref<1x64x32xbf16, #tpu.memory_space<vmem>>, %arg14: memref<1x1x32xf32, #tpu.memory_space<vmem>>, %arg15: memref<1x1x32xf32, #tpu.memory_space<vmem>>, %arg16: memref<1x1x32xf32, #tpu.memory_space<vmem>>, %arg17: memref<16x32xf32, #tpu.memory_space<vmem>>, %arg18: memref<2x8x32xf32, #tpu.memory_space<vmem>>) attributes {dimension_semantics = [#tpu.dimension_semantics<arbitrary>], iteration_bounds = array<i64: 2>, scalar_prefetch = 0 : i64, scratch_operands = 1 : i64, tpu.core_type = #tpu.core_type<tc>, window_params = [{pipeline_mode = #tpu.pipeline_mode<synchronous>, transform_indices = @transform_0, window_bounds = array<i64: 16, 32>}, {pipeline_mode = #tpu.pipeline_mode<synchronous>, transform_indices = @transform_1, window_bounds = array<i64: 2, 1, 8>}, {pipeline_mode = #tpu.pipeline_mode<synchronous>, transform_indices = @transform_2, window_bounds = array<i64: 1, 32>}, {pipeline_mode = #tpu.pipeline_mode<synchronous>, transform_indices = @transform_3, window_bounds = array<i64: 1, 32>}, {transform_indices = @transform_4, window_bounds = array<i64: 1, 32, 96>}, {transform_indices = @transform_5, window_bounds = array<i64: 1, 1, 96>}, {transform_indices = @transform_6, window_bounds = array<i64: 1, 32, 32>}, {transform_indices = @transform_7, window_bounds = array<i64: 1, 1, 32>}, {transform_indices = @transform_8, window_bounds = array<i64: 1, 1, 32>}, {transform_indices = @transform_9, window_bounds = array<i64: 1, 1, 32>}, {transform_indices = @transform_10, window_bounds = array<i64: 1, 32, 64>}, {transform_indices = @transform_11, window_bounds = array<i64: 1, 1, 64>}, {transform_indices = @transform_12, window_bounds = array<i64: 1, 64, 32>}, {transform_indices = @transform_13, window_bounds = array<i64: 1, 1, 32>}, {transform_indices = @transform_14, window_bounds = array<i64: 1, 1, 32>}, {transform_indices = @transform_15, window_bounds = array<i64: 1, 1, 32>}, {pipeline_mode = #tpu.pipeline_mode<synchronous>, transform_indices = @transform_16, window_bounds = array<i64: 16, 32>}]} {
    %c0_i32 = arith.constant 0 : i32
    %0 = arith.cmpi eq, %arg0, %c0_i32 : i32
    %1 = arith.extui %0 : i1 to i32
    %c0_i32_0 = arith.constant 0 : i32
    %2 = arith.cmpi ne, %1, %c0_i32_0 : i32
    scf.if %2 {
      %c0_76 = arith.constant 0 : index
      %c0_77 = arith.constant 0 : index
      %152 = vector.load %arg1[%c0_76, %c0_77] : memref<16x32xf32, #tpu.memory_space<vmem>>, vector<16x32xf32>
      %c0_78 = arith.constant 0 : index
      %c0_79 = arith.constant 0 : index
      %153 = vector.load %arg3[%c0_78, %c0_79] : memref<1x32xf32, #tpu.memory_space<vmem>>, vector<1x32xf32>
      %c0_80 = arith.constant 0 : index
      %c0_81 = arith.constant 0 : index
      %154 = vector.load %arg4[%c0_80, %c0_81] : memref<1x32xf32, #tpu.memory_space<vmem>>, vector<1x32xf32>
      %cst_82 = arith.constant dense<0.000000e+00> : vector<16xf32>
      %155 = vector.multi_reduction <add>, %152, %cst_82 [1] : vector<16x32xf32> to vector<16xf32>
      %156 = vector.shape_cast %155 : vector<16xf32> to vector<16x1xf32>
      %cst_83 = arith.constant 3.200000e+01 : f32
      %157 = vector.broadcast %cst_83 : f32 to vector<16x1xf32>
      %158 = arith.divf %156, %157 : vector<16x1xf32>
      %159 = vector.broadcast %158 : vector<16x1xf32> to vector<16x32xf32>
      %160 = arith.subf %152, %159 : vector<16x32xf32>
      %161 = arith.mulf %160, %160 : vector<16x32xf32>
      %cst_84 = arith.constant dense<0.000000e+00> : vector<16xf32>
      %162 = vector.multi_reduction <add>, %161, %cst_84 [1] : vector<16x32xf32> to vector<16xf32>
      %163 = vector.shape_cast %162 : vector<16xf32> to vector<16x1xf32>
      %cst_85 = arith.constant 3.200000e+01 : f32
      %164 = vector.broadcast %cst_85 : f32 to vector<16x1xf32>
      %165 = arith.divf %163, %164 : vector<16x1xf32>
      %166 = vector.broadcast %158 : vector<16x1xf32> to vector<16x32xf32>
      %167 = arith.subf %152, %166 : vector<16x32xf32>
      %cst_86 = arith.constant 9.99999996E-13 : f32
      %168 = vector.broadcast %cst_86 : f32 to vector<16x1xf32>
      %169 = arith.addf %165, %168 : vector<16x1xf32>
      %170 = math.rsqrt %169 : vector<16x1xf32>
      %171 = vector.broadcast %170 : vector<16x1xf32> to vector<16x32xf32>
      %172 = arith.mulf %167, %171 : vector<16x32xf32>
      %173 = vector.broadcast %153 : vector<1x32xf32> to vector<16x32xf32>
      %174 = arith.mulf %172, %173 : vector<16x32xf32>
      %175 = vector.broadcast %154 : vector<1x32xf32> to vector<16x32xf32>
      %176 = arith.addf %174, %175 : vector<16x32xf32>
      %c0_87 = arith.constant 0 : index
      %c0_88 = arith.constant 0 : index
      %177 = vector.load %arg17[%c0_87, %c0_88] : memref<16x32xf32, #tpu.memory_space<vmem>>, vector<16x32xf32>
      tpu.vector_store %arg17[%c0_87, %c0_88], %176 {strides = array<i32>} : memref<16x32xf32, #tpu.memory_space<vmem>>, vector<16x32xf32>,
    } else {
    }
    %c0 = arith.constant 0 : index
    %c0_1 = arith.constant 0 : index
    %3 = vector.load %arg17[%c0, %c0_1] : memref<16x32xf32, #tpu.memory_space<vmem>>, vector<16x32xf32>
    %4 = arith.truncf %3 : vector<16x32xf32> to vector<16x32xbf16>
    %c0_2 = arith.constant 0 : index
    %c0_3 = arith.constant 0 : index
    %c0_4 = arith.constant 0 : index
    %5 = vector.load %arg5[%c0_2, %c0_3, %c0_4] : memref<1x32x96xbf16, #tpu.memory_space<vmem>>, vector<1x32x96xbf16>
    %6 = vector.shape_cast %5 : vector<1x32x96xbf16> to vector<32x96xbf16>
    %cst = arith.constant dense<0.000000e+00> : vector<16x96xf32>
    %7 = tpu.matmul %4, %6, %cst {dimension_numbers = #tpu.dot_dimension_numbers<[1], [0], [0], [1], [0, 0, 1, 1], [], []>} : vector<16x32xbf16>, vector<32x96xbf16>, vector<16x96xf32> -> vector<16x96xf32>
    %c0_5 = arith.constant 0 : index
    %c0_6 = arith.constant 0 : index
    %c0_7 = arith.constant 0 : index
    %8 = vector.load %arg6[%c0_5, %c0_6, %c0_7] : memref<1x1x96xf32, #tpu.memory_space<vmem>>, vector<1x1x96xf32>
    %9 = vector.shape_cast %8 : vector<1x1x96xf32> to vector<1x96xf32>
    %10 = vector.broadcast %9 : vector<1x96xf32> to vector<16x96xf32>
    %11 = arith.addf %7, %10 : vector<16x96xf32>
    %12 = vector.shape_cast %11 : vector<16x96xf32> to vector<2x8x96xf32>
    %c0_8 = arith.constant 0 : index
    %c0_9 = arith.constant 0 : index
    %c0_10 = arith.constant 0 : index
    %13 = vector.load %arg2[%c0_8, %c0_9, %c0_10] : memref<2x1x8xf32, #tpu.memory_space<vmem>>, vector<2x1x8xf32>
    %14 = vector.extract_strided_slice %12 {offsets = [0, 0, 0], sizes = [2, 8, 16], strides = [1, 1, 1]} : vector<2x8x96xf32> to vector<2x8x16xf32>
    %15 = vector.extract_strided_slice %12 {offsets = [0, 0, 32], sizes = [2, 8, 16], strides = [1, 1, 1]} : vector<2x8x96xf32> to vector<2x8x16xf32>
    %16 = vector.extract_strided_slice %12 {offsets = [0, 0, 64], sizes = [2, 8, 16], strides = [1, 1, 1]} : vector<2x8x96xf32> to vector<2x8x16xf32>
    %17 = arith.truncf %14 : vector<2x8x16xf32> to vector<2x8x16xbf16>
    %18 = arith.truncf %15 : vector<2x8x16xf32> to vector<2x8x16xbf16>
    "tpu.trace_start"() <{level = 10 : i32, message = "bqd,bkd->bqk"}> : () -> ()
    %cst_11 = arith.constant dense<0.000000e+00> : vector<2x8x8xf32>
    %19 = tpu.matmul %17, %18, %cst_11 {dimension_numbers = #tpu.dot_dimension_numbers<[2], [2], [1], [1], [0, 0, 0, 1, 1, 1], [0], [0]>} : vector<2x8x16xbf16>, vector<2x8x16xbf16>, vector<2x8x8xf32> -> vector<2x8x8xf32>
    "tpu.trace_stop"() : () -> ()
    %20 = vector.broadcast %13 : vector<2x1x8xf32> to vector<2x8x8xf32>
    %21 = arith.addf %19, %20 : vector<2x8x8xf32>
    %cst_12 = arith.constant dense<0xFF800000> : vector<2x8xf32>
    %22 = vector.multi_reduction <maximumf>, %21, %cst_12 [2] : vector<2x8x8xf32> to vector<2x8xf32>
    %23 = vector.shape_cast %22 : vector<2x8xf32> to vector<2x8x1xf32>
    %24 = vector.broadcast %23 : vector<2x8x1xf32> to vector<2x8x8xf32>
    %25 = arith.subf %21, %24 : vector<2x8x8xf32>
    %26 = math.exp %25 : vector<2x8x8xf32>
    %cst_13 = arith.constant dense<0.000000e+00> : vector<2x8xf32>
    %27 = vector.multi_reduction <add>, %26, %cst_13 [2] : vector<2x8x8xf32> to vector<2x8xf32>
    %28 = vector.shape_cast %27 : vector<2x8xf32> to vector<2x8x1xf32>
    %29 = tpu.reciprocal %28 {approx = true} : vector<2x8x1xf32> -> vector<2x8x1xf32>
    %30 = vector.broadcast %29 : vector<2x8x1xf32> to vector<2x8x8xf32>
    %31 = arith.mulf %26, %30 : vector<2x8x8xf32>
    %32 = arith.truncf %31 : vector<2x8x8xf32> to vector<2x8x8xbf16>
    %33 = arith.truncf %16 : vector<2x8x16xf32> to vector<2x8x16xbf16>
    "tpu.trace_start"() <{level = 10 : i32, message = "bqk,bkd->bqd"}> : () -> ()
    %cst_14 = arith.constant dense<0.000000e+00> : vector<2x8x16xf32>
    %34 = tpu.matmul %32, %33, %cst_14 {dimension_numbers = #tpu.dot_dimension_numbers<[2], [1], [1], [2], [0, 0, 0, 1, 1, 2], [0], [0]>} : vector<2x8x8xbf16>, vector<2x8x16xbf16>, vector<2x8x16xf32> -> vector<2x8x16xf32>
    "tpu.trace_stop"() : () -> ()
    %c0_15 = arith.constant 0 : index
    %c0_16 = arith.constant 0 : index
    %c0_17 = arith.constant 0 : index
    %35 = vector.load %arg18[%c0_15, %c0_16, %c0_17] : memref<2x8x32xf32, #tpu.memory_space<vmem>>, vector<2x8x16xf32>
    tpu.vector_store %arg18[%c0_15, %c0_16, %c0_17], %34 {strides = array<i32>} : memref<2x8x32xf32, #tpu.memory_space<vmem>>, vector<2x8x16xf32>,
    %36 = vector.extract_strided_slice %12 {offsets = [0, 0, 16], sizes = [2, 8, 16], strides = [1, 1, 1]} : vector<2x8x96xf32> to vector<2x8x16xf32>
    %37 = vector.extract_strided_slice %12 {offsets = [0, 0, 48], sizes = [2, 8, 16], strides = [1, 1, 1]} : vector<2x8x96xf32> to vector<2x8x16xf32>
    %38 = vector.extract_strided_slice %12 {offsets = [0, 0, 80], sizes = [2, 8, 16], strides = [1, 1, 1]} : vector<2x8x96xf32> to vector<2x8x16xf32>
    %39 = arith.truncf %36 : vector<2x8x16xf32> to vector<2x8x16xbf16>
    %40 = arith.truncf %37 : vector<2x8x16xf32> to vector<2x8x16xbf16>
    "tpu.trace_start"() <{level = 10 : i32, message = "bqd,bkd->bqk"}> : () -> ()
    %cst_18 = arith.constant dense<0.000000e+00> : vector<2x8x8xf32>
    %41 = tpu.matmul %39, %40, %cst_18 {dimension_numbers = #tpu.dot_dimension_numbers<[2], [2], [1], [1], [0, 0, 0, 1, 1, 1], [0], [0]>} : vector<2x8x16xbf16>, vector<2x8x16xbf16>, vector<2x8x8xf32> -> vector<2x8x8xf32>
    "tpu.trace_stop"() : () -> ()
    %42 = vector.broadcast %13 : vector<2x1x8xf32> to vector<2x8x8xf32>
    %43 = arith.addf %41, %42 : vector<2x8x8xf32>
    %cst_19 = arith.constant dense<0xFF800000> : vector<2x8xf32>
    %44 = vector.multi_reduction <maximumf>, %43, %cst_19 [2] : vector<2x8x8xf32> to vector<2x8xf32>
    %45 = vector.shape_cast %44 : vector<2x8xf32> to vector<2x8x1xf32>
    %46 = vector.broadcast %45 : vector<2x8x1xf32> to vector<2x8x8xf32>
    %47 = arith.subf %43, %46 : vector<2x8x8xf32>
    %48 = math.exp %47 : vector<2x8x8xf32>
    %cst_20 = arith.constant dense<0.000000e+00> : vector<2x8xf32>
    %49 = vector.multi_reduction <add>, %48, %cst_20 [2] : vector<2x8x8xf32> to vector<2x8xf32>
    %50 = vector.shape_cast %49 : vector<2x8xf32> to vector<2x8x1xf32>
    %51 = tpu.reciprocal %50 {approx = true} : vector<2x8x1xf32> -> vector<2x8x1xf32>
    %52 = vector.broadcast %51 : vector<2x8x1xf32> to vector<2x8x8xf32>
    %53 = arith.mulf %48, %52 : vector<2x8x8xf32>
    %54 = arith.truncf %53 : vector<2x8x8xf32> to vector<2x8x8xbf16>
    %55 = arith.truncf %38 : vector<2x8x16xf32> to vector<2x8x16xbf16>
    "tpu.trace_start"() <{level = 10 : i32, message = "bqk,bkd->bqd"}> : () -> ()
    %cst_21 = arith.constant dense<0.000000e+00> : vector<2x8x16xf32>
    %56 = tpu.matmul %54, %55, %cst_21 {dimension_numbers = #tpu.dot_dimension_numbers<[2], [1], [1], [2], [0, 0, 0, 1, 1, 2], [0], [0]>} : vector<2x8x8xbf16>, vector<2x8x16xbf16>, vector<2x8x16xf32> -> vector<2x8x16xf32>
    "tpu.trace_stop"() : () -> ()
    %c0_22 = arith.constant 0 : index
    %c0_23 = arith.constant 0 : index
    %c16 = arith.constant 16 : index
    %57 = vector.load %arg18[%c0_22, %c0_23, %c16] : memref<2x8x32xf32, #tpu.memory_space<vmem>>, vector<2x8x16xf32>
    tpu.vector_store %arg18[%c0_22, %c0_23, %c16], %56 {strides = array<i32>} : memref<2x8x32xf32, #tpu.memory_space<vmem>>, vector<2x8x16xf32>,
    %c0_24 = arith.constant 0 : index
    %c0_25 = arith.constant 0 : index
    %c0_26 = arith.constant 0 : index
    %58 = vector.load %arg18[%c0_24, %c0_25, %c0_26] : memref<2x8x32xf32, #tpu.memory_space<vmem>>, vector<2x8x32xf32>
    %59 = vector.shape_cast %58 : vector<2x8x32xf32> to vector<16x32xf32>
    %60 = arith.truncf %59 : vector<16x32xf32> to vector<16x32xbf16>
    %c0_27 = arith.constant 0 : index
    %c0_28 = arith.constant 0 : index
    %c0_29 = arith.constant 0 : index
    %61 = vector.load %arg7[%c0_27, %c0_28, %c0_29] : memref<1x32x32xbf16, #tpu.memory_space<vmem>>, vector<1x32x32xbf16>
    %62 = vector.shape_cast %61 : vector<1x32x32xbf16> to vector<32x32xbf16>
    %cst_30 = arith.constant dense<0.000000e+00> : vector<16x32xf32>
    %63 = tpu.matmul %60, %62, %cst_30 {dimension_numbers = #tpu.dot_dimension_numbers<[1], [0], [0], [1], [0, 0, 1, 1], [], []>} : vector<16x32xbf16>, vector<32x32xbf16>, vector<16x32xf32> -> vector<16x32xf32>
    %c0_31 = arith.constant 0 : index
    %c0_32 = arith.constant 0 : index
    %c0_33 = arith.constant 0 : index
    %64 = vector.load %arg8[%c0_31, %c0_32, %c0_33] : memref<1x1x32xf32, #tpu.memory_space<vmem>>, vector<1x1x32xf32>
    %65 = vector.shape_cast %64 : vector<1x1x32xf32> to vector<1x32xf32>
    %66 = vector.broadcast %65 : vector<1x32xf32> to vector<16x32xf32>
    %67 = arith.addf %63, %66 : vector<16x32xf32>
    %68 = arith.addf %67, %3 : vector<16x32xf32>
    %c0_34 = arith.constant 0 : index
    %c0_35 = arith.constant 0 : index
    %c0_36 = arith.constant 0 : index
    %69 = vector.load %arg9[%c0_34, %c0_35, %c0_36] : memref<1x1x32xf32, #tpu.memory_space<vmem>>, vector<1x1x32xf32>
    %70 = vector.shape_cast %69 : vector<1x1x32xf32> to vector<1x32xf32>
    %c0_37 = arith.constant 0 : index
    %c0_38 = arith.constant 0 : index
    %c0_39 = arith.constant 0 : index
    %71 = vector.load %arg10[%c0_37, %c0_38, %c0_39] : memref<1x1x32xf32, #tpu.memory_space<vmem>>, vector<1x1x32xf32>
    %72 = vector.shape_cast %71 : vector<1x1x32xf32> to vector<1x32xf32>
    %cst_40 = arith.constant dense<0.000000e+00> : vector<16xf32>
    %73 = vector.multi_reduction <add>, %68, %cst_40 [1] : vector<16x32xf32> to vector<16xf32>
    %74 = vector.shape_cast %73 : vector<16xf32> to vector<16x1xf32>
    %cst_41 = arith.constant 3.200000e+01 : f32
    %75 = vector.broadcast %cst_41 : f32 to vector<16x1xf32>
    %76 = arith.divf %74, %75 : vector<16x1xf32>
    %77 = vector.broadcast %76 : vector<16x1xf32> to vector<16x32xf32>
    %78 = arith.subf %68, %77 : vector<16x32xf32>
    %79 = arith.mulf %78, %78 : vector<16x32xf32>
    %cst_42 = arith.constant dense<0.000000e+00> : vector<16xf32>
    %80 = vector.multi_reduction <add>, %79, %cst_42 [1] : vector<16x32xf32> to vector<16xf32>
    %81 = vector.shape_cast %80 : vector<16xf32> to vector<16x1xf32>
    %cst_43 = arith.constant 3.200000e+01 : f32
    %82 = vector.broadcast %cst_43 : f32 to vector<16x1xf32>
    %83 = arith.divf %81, %82 : vector<16x1xf32>
    %84 = vector.broadcast %76 : vector<16x1xf32> to vector<16x32xf32>
    %85 = arith.subf %68, %84 : vector<16x32xf32>
    %cst_44 = arith.constant 9.99999996E-13 : f32
    %86 = vector.broadcast %cst_44 : f32 to vector<16x1xf32>
    %87 = arith.addf %83, %86 : vector<16x1xf32>
    %88 = math.rsqrt %87 : vector<16x1xf32>
    %89 = vector.broadcast %88 : vector<16x1xf32> to vector<16x32xf32>
    %90 = arith.mulf %85, %89 : vector<16x32xf32>
    %91 = vector.broadcast %70 : vector<1x32xf32> to vector<16x32xf32>
    %92 = arith.mulf %90, %91 : vector<16x32xf32>
    %93 = vector.broadcast %72 : vector<1x32xf32> to vector<16x32xf32>
    %94 = arith.addf %92, %93 : vector<16x32xf32>
    %95 = arith.truncf %94 : vector<16x32xf32> to vector<16x32xbf16>
    %c0_45 = arith.constant 0 : index
    %c0_46 = arith.constant 0 : index
    %c0_47 = arith.constant 0 : index
    %96 = vector.load %arg11[%c0_45, %c0_46, %c0_47] : memref<1x32x64xbf16, #tpu.memory_space<vmem>>, vector<1x32x64xbf16>
    %97 = vector.shape_cast %96 : vector<1x32x64xbf16> to vector<32x64xbf16>
    %cst_48 = arith.constant dense<0.000000e+00> : vector<16x64xf32>
    %98 = tpu.matmul %95, %97, %cst_48 {dimension_numbers = #tpu.dot_dimension_numbers<[1], [0], [0], [1], [0, 0, 1, 1], [], []>} : vector<16x32xbf16>, vector<32x64xbf16>, vector<16x64xf32> -> vector<16x64xf32>
    %c0_49 = arith.constant 0 : index
    %c0_50 = arith.constant 0 : index
    %c0_51 = arith.constant 0 : index
    %99 = vector.load %arg12[%c0_49, %c0_50, %c0_51] : memref<1x1x64xf32, #tpu.memory_space<vmem>>, vector<1x1x64xf32>
    %100 = vector.shape_cast %99 : vector<1x1x64xf32> to vector<1x64xf32>
    %101 = vector.broadcast %100 : vector<1x64xf32> to vector<16x64xf32>
    %102 = arith.addf %98, %101 : vector<16x64xf32>
    %cst_52 = arith.constant 5.000000e-01 : f32
    %103 = vector.broadcast %cst_52 : f32 to vector<16x64xf32>
    %104 = arith.mulf %103, %102 : vector<16x64xf32>
    %cst_53 = arith.constant 4.471500e-02 : f32
    %105 = vector.broadcast %cst_53 : f32 to vector<16x64xf32>
    %106 = arith.mulf %105, %102 : vector<16x64xf32>
    %107 = arith.mulf %106, %102 : vector<16x64xf32>
    %108 = arith.mulf %107, %102 : vector<16x64xf32>
    %109 = arith.addf %102, %108 : vector<16x64xf32>
    %cst_54 = arith.constant 0.797884583 : f32
    %110 = vector.broadcast %cst_54 : f32 to vector<16x64xf32>
    %111 = arith.mulf %110, %109 : vector<16x64xf32>
    %112 = math.tanh %111 : vector<16x64xf32>
    %cst_55 = arith.constant 1.000000e+00 : f32
    %113 = vector.broadcast %cst_55 : f32 to vector<16x64xf32>
    %114 = arith.addf %113, %112 : vector<16x64xf32>
    %115 = arith.mulf %104, %114 : vector<16x64xf32>
    %116 = arith.truncf %115 : vector<16x64xf32> to vector<16x64xbf16>
    %c0_56 = arith.constant 0 : index
    %c0_57 = arith.constant 0 : index
    %c0_58 = arith.constant 0 : index
    %117 = vector.load %arg13[%c0_56, %c0_57, %c0_58] : memref<1x64x32xbf16, #tpu.memory_space<vmem>>, vector<1x64x32xbf16>
    %118 = vector.shape_cast %117 : vector<1x64x32xbf16> to vector<64x32xbf16>
    %cst_59 = arith.constant dense<0.000000e+00> : vector<16x32xf32>
    %119 = tpu.matmul %116, %118, %cst_59 {dimension_numbers = #tpu.dot_dimension_numbers<[1], [0], [0], [1], [0, 0, 1, 1], [], []>} : vector<16x64xbf16>, vector<64x32xbf16>, vector<16x32xf32> -> vector<16x32xf32>
    %c0_60 = arith.constant 0 : index
    %c0_61 = arith.constant 0 : index
    %c0_62 = arith.constant 0 : index
    %120 = vector.load %arg14[%c0_60, %c0_61, %c0_62] : memref<1x1x32xf32, #tpu.memory_space<vmem>>, vector<1x1x32xf32>
    %121 = vector.shape_cast %120 : vector<1x1x32xf32> to vector<1x32xf32>
    %122 = vector.broadcast %121 : vector<1x32xf32> to vector<16x32xf32>
    %123 = arith.addf %119, %122 : vector<16x32xf32>
    %124 = arith.addf %123, %94 : vector<16x32xf32>
    %c0_63 = arith.constant 0 : index
    %c0_64 = arith.constant 0 : index
    %c0_65 = arith.constant 0 : index
    %125 = vector.load %arg15[%c0_63, %c0_64, %c0_65] : memref<1x1x32xf32, #tpu.memory_space<vmem>>, vector<1x1x32xf32>
    %126 = vector.shape_cast %125 : vector<1x1x32xf32> to vector<1x32xf32>
    %c0_66 = arith.constant 0 : index
    %c0_67 = arith.constant 0 : index
    %c0_68 = arith.constant 0 : index
    %127 = vector.load %arg16[%c0_66, %c0_67, %c0_68] : memref<1x1x32xf32, #tpu.memory_space<vmem>>, vector<1x1x32xf32>
    %128 = vector.shape_cast %127 : vector<1x1x32xf32> to vector<1x32xf32>
    %cst_69 = arith.constant dense<0.000000e+00> : vector<16xf32>
    %129 = vector.multi_reduction <add>, %124, %cst_69 [1] : vector<16x32xf32> to vector<16xf32>
    %130 = vector.shape_cast %129 : vector<16xf32> to vector<16x1xf32>
    %cst_70 = arith.constant 3.200000e+01 : f32
    %131 = vector.broadcast %cst_70 : f32 to vector<16x1xf32>
    %132 = arith.divf %130, %131 : vector<16x1xf32>
    %133 = vector.broadcast %132 : vector<16x1xf32> to vector<16x32xf32>
    %134 = arith.subf %124, %133 : vector<16x32xf32>
    %135 = arith.mulf %134, %134 : vector<16x32xf32>
    %cst_71 = arith.constant dense<0.000000e+00> : vector<16xf32>
    %136 = vector.multi_reduction <add>, %135, %cst_71 [1] : vector<16x32xf32> to vector<16xf32>
    %137 = vector.shape_cast %136 : vector<16xf32> to vector<16x1xf32>
    %cst_72 = arith.constant 3.200000e+01 : f32
    %138 = vector.broadcast %cst_72 : f32 to vector<16x1xf32>
    %139 = arith.divf %137, %138 : vector<16x1xf32>
    %140 = vector.broadcast %132 : vector<16x1xf32> to vector<16x32xf32>
    %141 = arith.subf %124, %140 : vector<16x32xf32>
    %cst_73 = arith.constant 9.99999996E-13 : f32
    %142 = vector.broadcast %cst_73 : f32 to vector<16x1xf32>
    %143 = arith.addf %139, %142 : vector<16x1xf32>
    %144 = math.rsqrt %143 : vector<16x1xf32>
    %145 = vector.broadcast %144 : vector<16x1xf32> to vector<16x32xf32>
    %146 = arith.mulf %141, %145 : vector<16x32xf32>
    %147 = vector.broadcast %126 : vector<1x32xf32> to vector<16x32xf32>
    %148 = arith.mulf %146, %147 : vector<16x32xf32>
    %149 = vector.broadcast %128 : vector<1x32xf32> to vector<16x32xf32>
    %150 = arith.addf %148, %149 : vector<16x32xf32>
    %c0_74 = arith.constant 0 : index
    %c0_75 = arith.constant 0 : index
    %151 = vector.load %arg17[%c0_74, %c0_75] : memref<16x32xf32, #tpu.memory_space<vmem>>, vector<16x32xf32>
    tpu.vector_store %arg17[%c0_74, %c0_75], %150 {strides = array<i32>} : memref<16x32xf32, #tpu.memory_space<vmem>>, vector<16x32xf32>,
    return
  }
  func.func @transform_0(%arg0: i32) -> (i32, i32) {
    %c0_i32 = arith.constant 0 : i32
    %c0_i32_0 = arith.constant 0 : i32
    %c0_i32_1 = arith.constant 0 : i32
    return %c0_i32, %c0_i32_0 : i32, i32
  }
  func.func @transform_1(%arg0: i32) -> (i32, i32, i32) {
    %c0_i32 = arith.constant 0 : i32
    %c0_i32_0 = arith.constant 0 : i32
    %c0_i32_1 = arith.constant 0 : i32
    %c0_i32_2 = arith.constant 0 : i32
    return %c0_i32, %c0_i32_0, %c0_i32_1 : i32, i32, i32
  }
  func.func @transform_2(%arg0: i32) -> (i32, i32) {
    %c0_i32 = arith.constant 0 : i32
    %c0_i32_0 = arith.constant 0 : i32
    %c0_i32_1 = arith.constant 0 : i32
    return %c0_i32, %c0_i32_0 : i32, i32
  }
  func.func @transform_3(%arg0: i32) -> (i32, i32) {
    %c0_i32 = arith.constant 0 : i32
    %c0_i32_0 = arith.constant 0 : i32
    %c0_i32_1 = arith.constant 0 : i32
    return %c0_i32, %c0_i32_0 : i32, i32
  }
  func.func @transform_4(%arg0: i32) -> (i32, i32, i32) {
    %c0_i32 = arith.constant 0 : i32
    %c0_i32_0 = arith.constant 0 : i32
    %c0_i32_1 = arith.constant 0 : i32
    return %arg0, %c0_i32, %c0_i32_0 : i32, i32, i32
  }
  func.func @transform_5(%arg0: i32) -> (i32, i32, i32) {
    %c0_i32 = arith.constant 0 : i32
    %c0_i32_0 = arith.constant 0 : i32
    %c0_i32_1 = arith.constant 0 : i32
    return %arg0, %c0_i32, %c0_i32_0 : i32, i32, i32
  }
  func.func @transform_6(%arg0: i32) -> (i32, i32, i32) {
    %c0_i32 = arith.constant 0 : i32
    %c0_i32_0 = arith.constant 0 : i32
    %c0_i32_1 = arith.constant 0 : i32
    return %arg0, %c0_i32, %c0_i32_0 : i32, i32, i32
  }
  func.func @transform_7(%arg0: i32) -> (i32, i32, i32) {
    %c0_i32 = arith.constant 0 : i32
    %c0_i32_0 = arith.constant 0 : i32
    %c0_i32_1 = arith.constant 0 : i32
    return %arg0, %c0_i32, %c0_i32_0 : i32, i32, i32
  }
  func.func @transform_8(%arg0: i32) -> (i32, i32, i32) {
    %c0_i32 = arith.constant 0 : i32
    %c0_i32_0 = arith.constant 0 : i32
    %c0_i32_1 = arith.constant 0 : i32
    return %arg0, %c0_i32, %c0_i32_0 : i32, i32, i32
  }
  func.func @transform_9(%arg0: i32) -> (i32, i32, i32) {
    %c0_i32 = arith.constant 0 : i32
    %c0_i32_0 = arith.constant 0 : i32
    %c0_i32_1 = arith.constant 0 : i32
    return %arg0, %c0_i32, %c0_i32_0 : i32, i32, i32
  }
  func.func @transform_10(%arg0: i32) -> (i32, i32, i32) {
    %c0_i32 = arith.constant 0 : i32
    %c0_i32_0 = arith.constant 0 : i32
    %c0_i32_1 = arith.constant 0 : i32
    return %arg0, %c0_i32, %c0_i32_0 : i32, i32, i32
  }
  func.func @transform_11(%arg0: i32) -> (i32, i32, i32) {
    %c0_i32 = arith.constant 0 : i32
    %c0_i32_0 = arith.constant 0 : i32
    %c0_i32_1 = arith.constant 0 : i32
    return %arg0, %c0_i32, %c0_i32_0 : i32, i32, i32
  }
  func.func @transform_12(%arg0: i32) -> (i32, i32, i32) {
    %c0_i32 = arith.constant 0 : i32
    %c0_i32_0 = arith.constant 0 : i32
    %c0_i32_1 = arith.constant 0 : i32
    return %arg0, %c0_i32, %c0_i32_0 : i32, i32, i32
  }
  func.func @transform_13(%arg0: i32) -> (i32, i32, i32) {
    %c0_i32 = arith.constant 0 : i32
    %c0_i32_0 = arith.constant 0 : i32
    %c0_i32_1 = arith.constant 0 : i32
    return %arg0, %c0_i32, %c0_i32_0 : i32, i32, i32
  }
  func.func @transform_14(%arg0: i32) -> (i32, i32, i32) {
    %c0_i32 = arith.constant 0 : i32
    %c0_i32_0 = arith.constant 0 : i32
    %c0_i32_1 = arith.constant 0 : i32
    return %arg0, %c0_i32, %c0_i32_0 : i32, i32, i32
  }
  func.func @transform_15(%arg0: i32) -> (i32, i32, i32) {
    %c0_i32 = arith.constant 0 : i32
    %c0_i32_0 = arith.constant 0 : i32
    %c0_i32_1 = arith.constant 0 : i32
    return %arg0, %c0_i32, %c0_i32_0 : i32, i32, i32
  }
  func.func @transform_16(%arg0: i32) -> (i32, i32) {
    %c0_i32 = arith.constant 0 : i32
    %c0_i32_0 = arith.constant 0 : i32
    %c0_i32_1 = arith.constant 0 : i32
    return %c0_i32, %c0_i32_0 : i32, i32
  }
}

</mosaic_0001>

<bundles_post_ra>
// kernel: tpu_custom_call.1
= control target key start
LH: loop header
LB: loop body
LE: loop exit
PB: predicated region body
PF: predicated region fallthrough
CT: control target
= control target key end

     0   :  { %s2631_s0 = inlined_call_operand.hbm [shape: f32[16,32], index: 0, kind: input, shape index: {}]   ;;  %s2632_s1 = inlined_call_operand.vmem [shape: f32[2,1,8], index: 1, kind: input, shape index: {}]   ;;  %s2633_s2 = inlined_call_operand.vmem [shape: f32[1,32], index: 2, kind: input, shape index: {}]   ;;  %s2634_s3 = inlined_call_operand.hbm [shape: f32[1,32], index: 3, kind: input, shape index: {}]   ;;  %s2635_s4 = inlined_call_operand.vmem [shape: bf16[2,32,96], index: 4, kind: input, shape index: {}]   ;;  %s2636_s5 = inlined_call_operand.vmem [shape: f32[2,1,96], index: 5, kind: input, shape index: {}]   ;;  %s2637_s6 = inlined_call_operand.vmem [shape: bf16[2,32,32], index: 6, kind: input, shape index: {}]   ;;  %s2638_s7 = inlined_call_operand.vmem [shape: f32[2,1,32], index: 7, kind: input, shape index: {}]   ;;  %s2639_s8 = inlined_call_operand.vmem [shape: f32[2,1,32], index: 8, kind: input, shape index: {}]   ;;  %s2640_s9 = inlined_call_operand.vmem [shape: f32[2,1,32], index: 9, kind: input, shape index: {}]   ;;  %s2641_s10 = inlined_call_operand.vmem [shape: bf16[2,32,64], index: 10, kind: input, shape index: {}]   ;;  %s2642_s11 = inlined_call_operand.vmem [shape: f32[2,1,64], index: 11, kind: input, shape index: {}]   ;;  %s2643_s12 = inlined_call_operand.vmem [shape: bf16[2,64,32], index: 12, kind: input, shape index: {}]   ;;  %s2644_s13 = inlined_call_operand.vmem [shape: f32[2,1,32], index: 13, kind: input, shape index: {}]   ;;  %s2645_s14 = inlined_call_operand.vmem [shape: f32[2,1,32], index: 14, kind: input, shape index: {}]   ;;  %s2646_s15 = inlined_call_operand.vmem [shape: f32[2,1,32], index: 15, kind: input, shape index: {}]   ;;  %s2647_s16 = inlined_call_operand.hbm [shape: f32[16,32], index: 16, kind: output, shape index: {}]  }
   0x1   :  { %2656 = sst [smem:[#allocation14_spill]] %s2631_s0 }
   0x2   :  { %2657 = sst [smem:[#allocation15_spill]] %s2632_s1 }
   0x3   :  { %2658 = sst [smem:[#allocation16_spill]] %s2634_s3 }
   0x4   :  { %2659 = sst [smem:[#allocation17_spill]] %s2635_s4 }
   0x5   :  { %2660 = sst [smem:[#allocation18_spill]] %s2637_s6 }
   0x6   :  { %2661 = sst [smem:[#allocation19_spill]] %s2647_s16 }
   0x7   :  { %21 = vsyncpa [#allocation4], 0 }
   0x8   :  { %22 = vsyncpa [#allocation7], 0 }
   0x9   :  { %23 = vsyncpa [#allocation5], 0  ;;  %s2283_s21 = smov 0  }
   0xa LB: > { %2662 = sst [smem:[#allocation12_spill]] %s2181_s21  ;;  %s2289_s22 = sadd.s32 4294967295, %s2181_s21   ;;  %s2181_s21 = sphi %s2283_s21, %s29_s21  }
   0xb   : > { %p1819_p0 = scmp.ge.s32.totalorder %s2181_s21, 1  ;;  %p451_p1 = scmp.lt.s32.totalorder %s2181_s21, 3 }
   0xc   : > { %s2183_s23 = smov [#allocation3]   ;;  %p2649_p4 = scmp.eq.s32.totalorder %s2289_s22, 0 }
   0xd   : > { %s463_s24 = sshll.u32 %s2183_s23, 4  ;;  %p2294_p3 = pnand %p1819_p0, %p451_p1  ;;  %s464_s24 = int_to_ptr.vmem [resolvable:$true] %s463_s24 }
   0xe   : > { %s2184_s26 = smov [#allocation6]   ;;  %s2665_s0 = sld [smem:[#allocation14_spill]] }
   0xf   : > { %s2663_s25 = scalar_select %p2294_p3, 1, 0 }
  0x10   : > { %p2003_p5 = pneg %p2294_p3  ;;  %s483_s27 = sshll.u32 %s2184_s26, 4  ;;  %s2307_s27 = int_to_ptr.vmem [resolvable:$true] %s483_s27 }
  0x12   : > { %p2303_p6 = pnand %p2649_p4, %p2003_p5 }
  0x14   : > { %s2081_s17 = scalar_lea.hbm %s2665_s0, 256  ;;  %p2083_p8 = pneg %p2303_p6 }
  0x15   : > { %p2082_p7 = scmp.ne.s32.totalorder %s2665_s0, %s2081_s17  ;;  %p2088_p11 = scmp.lt.u32.totalorder %s2081_s17, %s2665_s0 }
  0x17   : > { %p2084_p9 = pnand %p2083_p8, %p2082_p7 }
  0x19   : > { %p2085_p10 = pneg %p2084_p9 }
  0x1b   : > { %p2090_p12 = pnand %p2088_p11, %p2085_p10 }
  0x1d   : > { %2093 = shalt.err (!%p2090_p12)
}
  0x1e   : > { %s2094_s26 = scalar_lea.vmem %s464_s24, 256  ;;  %p2102_p5 = scmp.lt.s32.totalorder %s464_s24, %s464_s24 }
  0x1f   : > { %p2095_p13 = scmp.ne.s32.totalorder %s464_s24, %s2094_s26  ;;  %p2103_p2 = scmp.lt.s32.totalorder %s2094_s26, %s2094_s26 }
  0x21   : > { %p2097_p0 = pnand %p2095_p13, %p2083_p8  ;;  %p2104_p4 = por %p2103_p2, %p2102_p5 }
  0x23   : > { %p2098_p1 = pneg %p2097_p0 }
  0x25   : > { %p2105_p3 = pnand %p2104_p4, %p2098_p1 }
  0x27   : > { %2108 = shalt.err (!%p2105_p3)
}
  0x28   : > { %s2185_s29 = smov 128   ;;  %s2186_s30 = smov 8  }
  0x29   : > { %2006 = dma.hbm_to_vmem [thread:$0]  (!%p2303_p6), %s2665_s0, 256, %s464_s24, [#allocation4], %s2185_s29, %s2185_s29, %s2186_s30  }
  0x2a   : > { %s2666_s3 = sld [smem:[#allocation16_spill]] }
  0x30   : > { %s2109_s23 = scalar_lea.hbm %s2666_s3, 16 }
  0x31   : > { %p2110_p7 = scmp.ne.s32.totalorder %s2666_s3, %s2109_s23  ;;  %p2116_p4 = scmp.lt.u32.totalorder %s2109_s23, %s2666_s3 }
  0x33   : > { %p2112_p2 = pnand %p2110_p7, %p2083_p8 }
  0x35   : > { %p2113_p3 = pneg %p2112_p2 }
  0x37   : > { %p2118_p9 = pnand %p2116_p4, %p2113_p3 }
  0x39   : > { %2121 = shalt.err (!%p2118_p9)
}
  0x3a   : > { %s2122_s24 = scalar_lea.vmem %s2307_s27, 16  ;;  %s2129_s16 = scalar_lea.vmem %s2307_s27, 32 }
  0x3b   : > { %p2123_p10 = scmp.ne.s32.totalorder %s2307_s27, %s2122_s24  ;;  %p2130_p13 = scmp.lt.s32.totalorder %s2307_s27, %s2307_s27 }
  0x3c   : > { %p2131_p0 = scmp.lt.s32.totalorder %s2129_s16, %s2122_s24 }
  0x3d   : > { %p2125_p11 = pnand %p2123_p10, %p2083_p8 }
  0x3e   : > { %p2132_p1 = por %p2131_p0, %p2130_p13 }
  0x3f   : > { %p2126_p12 = pneg %p2125_p11 }
  0x41   : > { %p2133_p5 = pnand %p2132_p1, %p2126_p12 }
  0x43   : > { %2136 = shalt.err (!%p2133_p5)
}
  0x44   : > { %2009 = dma.hbm_to_vmem [thread:$0]  (!%p2303_p6), %s2666_s3, 16, %s2307_s27, [#allocation7]  }
  0x45   : > { %p2667_p7 = scmp.ne.s32.totalorder %s2663_s25, 0 }
  0x47   : > { %576 = sbr.rel (%p2667_p7) target bundleno = 3495 (0xda7), region = 84 }
  0x4e   : > { %p2668_p8 = scmp.eq.s32.totalorder %s2289_s22, 0 }
  0x50   : > { %2168 = dma.done.wait (%p2668_p8), [#allocation4], 256   ;;  %p2669_p2 = pmov %p2668_p8 }
  0x52   : > { %2170 = vsyncadd (%p2669_p2), [#allocation4], 4294967040  ;;  %p2670_p3 = pmov %p2669_p2 }
  0x53   : > { %p2671_p4 = pmov %p2669_p2 }
  0x54   : > { %2172 = dma.done.wait (%p2670_p3), [#allocation7], 16  }
  0x55   : > { %2174 = vsyncadd (%p2671_p4), [#allocation7], 4294967280  ;;  %p664_p9 = scmp.lt.s32.totalorder %s2289_s22, 1  ;;  %s2672_s4 = sld [smem:[#allocation17_spill]] }
  0x56   : > { %s2673_s6 = sld [smem:[#allocation18_spill]]  ;;  %p2675_p6 = scmp.ne.s32.totalorder %s2289_s22, 0 }
  0x57   : > { %s2369_s28 = scalar_select %p664_p9, %s2289_s22, 1 }
  0x58   : > { %712 = sbr.rel (%p2675_p6) target bundleno = 407 (0x197), region = 96  ;;  %v713_v0 = vld [vmem:[#allocation3] sm:$0xff] (!%p2675_p6)  ;;  %vm717_vm0 = vcmask (!%p2675_p6), 261120   ;;  %v714_v1 = vld [vmem:[#allocation3 + $0x8] sm:$0xff] (!%p2675_p6)  ;;  %v1835_v21 = vld [vmem:[%s2633_s2] ss:$0 sm:$0xff] (!%p2675_p6) }
  0x59   : > { %s1873_s25 = sshll.u32 %s2369_s28, 4  ;;  %s701_s27 = scalar_lea.vmem %s2644_s13, %s2369_s28  ;;  %v718_v2 = vsel (!%p2675_p6), %vm717_vm0, %v713_v0, 0.0  ;;  %v721_v3 = vsel (!%p2675_p6), %vm717_vm0, %v714_v1, 0.0  ;;  %v1836_v23 = vld [vmem:[#allocation6] ss:$0 sm:$0xff] (!%p2675_p6) }
  0x5a   : > { %s704_s17 = scalar_lea.vmem %s2645_s14, %s2369_s28  ;;  %s707_s3 = scalar_lea.vmem %s2646_s15, %s2369_s28  ;;  %719 = vadd.xlane.f32.xlu0 (!%p2675_p6), %v718_v2 }
  0x5b   : > { %s2379_s19 = scalar_lea.vmem %s2672_s4, %s1873_s25  ;;  %s2401_s4 = scalar_lea.vmem %s2641_s10, %s1873_s25 }
  0x5c   : > { %s2384_s26 = scalar_lea.vmem %s2673_s6, %s1873_s25  ;;  %s693_s6 = scalar_lea.vmem %s2642_s11, %s2369_s28 }
  0x5d   : > { %2674 = sst [smem:[#allocation13_spill]] %s2384_s26  ;;  %s1876_s26 = sshll.u32 %s2369_s28, 5 }
  0x5e   : > { %s2411_s1 = scalar_lea.vmem %s2643_s12, %s1876_s26  ;;  %722 = vadd.xlane.f32.xlu0 (!%p2675_p6), %v721_v3 }
  0xe7   : > { %v720_v4 = vpop.xlane.xlu0 %719 }
  0xe8   : > { %v725_v5 = vmul.f32 0.03125, %v720_v4 }
  0xea   : > { %v727_v6 = vsub.f32 %v713_v0, %v725_v5 }
  0xeb   : > { %v723_v7 = vpop.xlane.xlu0 %722 }
  0xec   : > { %v726_v8 = vmul.f32 0.03125, %v723_v7  ;;  %v729_v9 = vmul.f32 %v727_v6, %v727_v6 }
  0xee   : > { %v728_v10 = vsub.f32 %v714_v1, %v726_v8  ;;  %v731_v11 = vsel %vm717_vm0, %v729_v9, 0.0 }
  0xef   : > { %732 = vadd.xlane.f32.xlu1 %v731_v11 }
  0xf0   : > { %v730_v12 = vmul.f32 %v728_v10, %v728_v10 }
  0xf2   : > { %v734_v13 = vsel %vm717_vm0, %v730_v12, 0.0 }
  0xf3   : > { %735 = vadd.xlane.f32.xlu1 %v734_v13 }
 0x17c   : > { %v733_v14 = vpop.xlane.xlu1 %732 }
 0x17d   : > { %v737_v15 = vmul.f32 0.03125, %v733_v14 }
 0x17f   : > { %v739_v16 = vadd.f32 1e-12, %v737_v15 }
 0x180   : > { %v736_v17 = vpop.xlane.xlu1 %735 }
 0x181   : > { %2039 = vrsqrt.f32 %v739_v16  ;;  %v738_v18 = vmul.f32 0.03125, %v736_v17 }
 0x183   : > { %v740_v19 = vadd.f32 1e-12, %v738_v18 }
 0x185   : > { %2041 = vrsqrt.f32 %v740_v19 }
 0x18b   : > { %v2040_v20 = vpop.eup %2039 }
 0x18c   : > { %v743_v22 = vmul.f32 %v2040_v20, %v727_v6 }
 0x18e   : > { %v751_v24 = vmul.f32 %v1835_v21, %v743_v22 }
 0x18f   : > { %v2042_v25 = vpop.eup %2041 }
 0x190   : > { %v759_v26 = vadd.f32 %v1836_v23, %v751_v24  ;;  %v744_v27 = vmul.f32 %v2042_v25, %v728_v10 }
 0x192   : > { %761 = vst.msk [vmem:[#allocation8] sm:$0xff] %vm717_vm0, %v759_v26  ;;  %v752_v28 = vmul.f32 %v1835_v21, %v744_v27 }
 0x194   : > { %v760_v29 = vadd.f32 %v1836_v23, %v752_v28 }
 0x196   : > { %762 = vst.msk [vmem:[#allocation8 + $0x8] sm:$0xff] %vm717_vm0, %v760_v29 }
 0x197 PF: > { %v2043_v30 = vld [vmem:[%s2379_s19] sm:$0xff]   ;;  %v2187_v31 = vmov 0.0   ;;  %v2044_v32 = vld [vmem:[%s2379_s19 + $0x8] sm:$0xff]   ;;  %vm2188_vm1 = vmmov 0   ;;  %vm789_vm2 = vcmask 261120   ;;  %s2676_s23 = scalar_lea.vmem %s2636_s5, %s2369_s28  ;;  %s2189_s24 = smov 96  }
 0x198   : > { %1907 = vmatprep.subr.bf16.mxu0 %v2187_v31  ;;  %1915 = vmatprep.subr.bf16.mxu1 %v2187_v31  ;;  %v1837_v36 = vld [vmem:[%s2676_s23] ss:$0 sm:$0xff]  ;;  %vm853_vm3 = vcmask 130048   ;;  %s2677_s21 = sld [smem:[#allocation15_spill]]  ;;  %vm949_vm4 = vcmask 64512   ;;  %s2190_s30 = smov 64  }
 0x199   : > { %1908 = vmatpush3.bf16.msra.mxu0 %v2043_v30  ;;  %1911 = vmatprep.mubr.msk.bf16.mxu0 %vm2188_vm1, %v2187_v31  ;;  %v2442_v33 = vld [vmem:[#allocation8] sm:$0xff]  ;;  %s2191_s26 = smov 80   ;;  %vm979_vm5 = vcmask 1043456   ;;  %s2192_s19 = smov 112   ;;  %vm1301_vm6 = vcmask 261248   ;;  %vm1547_vm7 = vcmask 523264  }
 0x19a   : > { %1909 = vmatprep.subr.bf16.mxu0 %v2187_v31  ;;  %1917 = vmatprep.mubr.msk.bf16.mxu1 %vm2188_vm1, %v2187_v31  ;;  %s2193_s20 = smov 48   ;;  %s2679_s23 = sld [smem:[#allocation13_spill]] }
 0x19b   : > { %p2014_p10 = scmp.eq.s32.totalorder %s2289_s22, 1 }
 0x19d   : > { %v2444_v34 = vld [vmem:[#allocation8 + $0x8] sm:$0xff]  ;;  %1910 = vmatpush3.bf16.msra.mxu0 %v2044_v32 }
 0x19e   : > { %v765_v35 = vpack.c.bf16 %v2444_v34, %v2442_v33  ;;  %1921 = vmatprep.subr.bf16.mxu0 %v2187_v31  ;;  %s2678_s29 = smov %s2677_s21  ;;  %v2481_v49 = vld [vmem:[%s2677_s21] ss:$0 sm:$0xff]  ;;  %s2680_s21 = scalar_lea.vmem %s2638_s7, %s2369_s28 }
 0x19f   : > { %v2487_v54 = vld [vmem:[%s2678_s29 + $0x1] ss:$0 sm:$0xff] }
 0x1a0   : > { %1912 = vmatmul.mubr.msk.bf16.vlgmr.msra.gmra.mrb[0].mxu0 %vm789_vm2, %v765_v35 }
 0x1a1   : > { %1923 = vmatprep.mubr.msk.bf16.mxu0 %vm2188_vm1, %v2187_v31 }
 0x273   : > { %v827_v37 = vpop.f32.mrb[0].mxu0 }
 0x274   : > { %v828_v38 = vadd.f32 %v1837_v36, %v827_v37  ;;  %v1913_v39 = vpop.f32.mrb[1].mxu0 }
 0x275   : > { %v830_v40 = vpop.f32.mrb[2].mxu0 }
 0x276   : > { %v2460_v41 = vpack.c.bf16 %v828_v38, %v828_v38  ;;  %v831_v42 = vadd.f32 %v1837_v36, %v830_v40  ;;  %v1914_v43 = vpop.f32.mrb[3].mxu0 }
 0x278   : > { %851 = vrot.lane.b32.xlu0 %v2460_v41, %s2189_s24  ;;  %v2463_v44 = vpack.c.bf16 %v831_v42, %v831_v42 }
 0x27c   : > { %901 = vrot.lane.b32.xlu0 %v2463_v44, %s2189_s24  ;;  %s2194_s24 = smov 16  }
 0x2ea   : > { %v852_v45 = vpop.permute.xlu0 %851 }
 0x2eb   : > { %v858_v46 = vsel %vm853_vm3, %v852_v45, 0 }
 0x2ec   : > { %1916 = vmatpush3.bf16.xpose.msra.mxu1 %v858_v46 }
 0x2ed   : > { %1927 = vmatprep.subr.bf16.mxu1 %v2187_v31 }
 0x2ee   : > { %v902_v47 = vpop.permute.xlu0 %901 }
 0x2ef   : > { %v907_v48 = vsel %vm853_vm3, %v902_v47, 0 }
 0x2f0   : > { %1922 = vmatpush3.bf16.xpose.msra.mxu0 %v907_v48 }
 0x2f1   : > { %1933 = vmatprep.subr.bf16.mxu0 %v2187_v31 }
 0x2f3   : > { %1918 = vmatmul.mubr.msk.bf16.vlgmr.msra.gmra.mrb[0].mxu1 %vm853_vm3, %v2460_v41 }
 0x2f4   : > { %1929 = vmatprep.mubr.msk.bf16.mxu1 %vm2188_vm1, %v2187_v31 }
 0x2f7   : > { %1924 = vmatmul.mubr.msk.bf16.vlgmr.msra.gmra.mrb[4].mxu0 %vm853_vm3, %v2463_v44 }
 0x2f8   : > { %1935 = vmatprep.mubr.msk.bf16.mxu0 %vm2188_vm1, %v2187_v31 }
 0x3c6   : > { %v894_v50 = vpop.f32.mrb[0].mxu1 }
 0x3c7   : > { %v895_v51 = vadd.f32 %v2481_v49, %v894_v50  ;;  %v1919_v52 = vpop.f32.mrb[1].mxu1 }
 0x3c8   : > { %v897_v53 = vpop.f32.mrb[2].mxu1 }
 0x3c9   : > { %v1920_v55 = vpop.f32.mrb[3].mxu1  ;;  %v950_v56 = vsel %vm949_vm4, %v895_v51, -inf }
 0x3ca   : > { %951 = vmax.xlane.f32.xlu1 %v950_v56  ;;  %v943_v57 = vpop.f32.mrb[4].mxu0 }
 0x3cb   : > { %v944_v58 = vadd.f32 %v2487_v54, %v943_v57  ;;  %v1925_v59 = vpop.f32.mrb[5].mxu0 }
 0x3cc   : > { %v946_v60 = vpop.f32.mrb[6].mxu0 }
 0x3cd   : > { %v1926_v61 = vpop.f32.mrb[7].mxu0  ;;  %v953_v62 = vsel %vm949_vm4, %v944_v58, -inf }
 0x3ce   : > { %954 = vmax.xlane.f32.xlu1 %v953_v62 }
 0x3df   : > { %974 = vrot.lane.b32.xlu1 %v2460_v41, %s2190_s30 }
 0x3e3   : > { %1023 = vrot.lane.b32.xlu1 %v2463_v44, %s2190_s30 }
 0x3e7   : > { %1075 = vrot.lane.b32.xlu1 %v2460_v41, %s2191_s26 }
 0x457   : > { %v952_v63 = vpop.xlane.xlu1 %951 }
 0x458   : > { %v956_v0 = vsub.f32 %v895_v51, %v952_v63 }
 0x45a   : > { %v958_v1 = vmul.f32 1.442695, %v956_v0 }
 0x45b   : > { %v955_v2 = vpop.xlane.xlu1 %954 }
 0x45c   : > { %2053 = vpow2.f32 %v958_v1  ;;  %v957_v3 = vsub.f32 %v944_v58, %v955_v2 }
 0x45e   : > { %v960_v4 = vmul.f32 1.442695, %v957_v3 }
 0x45f   : > { %v975_v5 = vpop.permute.xlu1 %974 }
 0x460   : > { %2055 = vpow2.f32 %v960_v4  ;;  %v981_v6 = vsel %vm979_vm5, %v975_v5, 0 }
 0x461   : > { %1928 = vmatpush3.bf16.msra.mxu1 %v981_v6 }
 0x462   : > { %1939 = vmatprep.subr.bf16.mxu1 %v2187_v31 }
 0x463   : > { %v1024_v7 = vpop.permute.xlu1 %1023 }
 0x464   : > { %v1029_v8 = vsel %vm979_vm5, %v1024_v7, 0 }
 0x465   : > { %1934 = vmatpush3.bf16.msra.mxu0 %v1029_v8  ;;  %v2045_v8 = vld [vmem:[%s2679_s23] sm:$0xff]  }
 0x466   : > { %v2054_v9 = vpop.eup %2053  ;;  %1945 = vmatprep.subr.bf16.mxu0 %v2187_v31 }
 0x467   : > { %v962_v10 = vsel %vm949_vm4, %v2054_v9, 0.0  ;;  %v1076_v13 = vpop.permute.xlu1 %1075 }
 0x468   : > { %963 = vadd.xlane.f32.xlu0 %v962_v10  ;;  %v1081_v20 = vsel %vm853_vm3, %v1076_v13, 0 }
 0x46a   : > { %v2056_v11 = vpop.eup %2055 }
 0x46b   : > { %v965_v12 = vsel %vm949_vm4, %v2056_v11, 0.0 }
 0x46c   : > { %966 = vadd.xlane.f32.xlu1 %v965_v12 }
 0x47d   : > { %1125 = vrot.lane.b32.xlu1 %v2463_v44, %s2191_s26 }
 0x47e   : > { %1073 = vrot.lane.b32.xlu0 %v2460_v41, %s2192_s19 }
 0x481   : > { %1123 = vrot.lane.b32.xlu1 %v2463_v44, %s2192_s19  ;;  %s2682_s19 = scalar_lea.vmem %s2640_s9, %s2369_s28 }
 0x4f5   : > { %v964_v14 = vpop.xlane.xlu0 %963 }
 0x4f6   : > { %2057 = vrcp.f32 %v964_v14 }
 0x4f9   : > { %v967_v15 = vpop.xlane.xlu1 %966  ;;  %v1074_v25 = vpop.permute.xlu0 %1073 }
 0x4fa   : > { %2059 = vrcp.f32 %v967_v15 }
 0x4fd   : > { %v1126_v22 = vpop.permute.xlu1 %1125 }
 0x4fe   : > { %v1131_v24 = vsel %vm853_vm3, %v1126_v22, 0 }
 0x500   : > { %v2058_v16 = vpop.eup %2057 }
 0x501   : > { %v970_v17 = vmul.f32 %v2058_v16, %v2054_v9  ;;  %v1124_v26 = vpop.permute.xlu1 %1123  ;;  %v2046_v9 = vld [vmem:[%s2679_s23 + $0x8] sm:$0xff]  }
 0x503   : > { %v972_v18 = vpack.c.bf16 %v970_v17, %v970_v17 }
 0x504   : > { %v2060_v19 = vpop.eup %2059 }
 0x505   : > { %v971_v21 = vmul.f32 %v2060_v19, %v2056_v11  ;;  %1930 = vmatmul.mubr.msk.bf16.vlgmr.msra.gmra.mrb[4].mxu1 %vm949_vm4, %v972_v18 }
 0x506   : > { %1940 = vmatpush3.bf16.xpose.msra.mxu1 %v1081_v20  ;;  %1941 = vmatprep.mubr.msk.bf16.mxu1 %vm2188_vm1, %v2187_v31 }
 0x507   : > { %v973_v23 = vpack.c.bf16 %v971_v21, %v971_v21  ;;  %1951 = vmatprep.subr.bf16.mxu1 %v2187_v31 }
 0x509   : > { %1936 = vmatmul.mubr.msk.bf16.vlgmr.msra.gmra.mrb[8].mxu0 %vm949_vm4, %v973_v23  ;;  %v1851_v23 = vld [vmem:[%s2680_s21] ss:$0 sm:$0xff]  ;;  %s2195_s21 = smov [#allocation8]  }
 0x50a   : > { %1946 = vmatpush3.bf16.xpose.msra.mxu0 %v1131_v24  ;;  %1947 = vmatprep.mubr.msk.bf16.mxu0 %vm2188_vm1, %v2187_v31  ;;  %s1646_s25 = sshll.u32 %s2195_s21, 4  ;;  %s1647_s25 = int_to_ptr.vmem [resolvable:$true] %s1646_s25 }
 0x50b   : > { %1957 = vmatprep.subr.bf16.mxu0 %v2187_v31  ;;  %p2144_p0 = scmp.lt.s32.totalorder %s1647_s25, %s1647_s25 }
 0x50d   : > { %1942 = vmatmul.mubr.msk.bf16.vlgmr.msra.gmra.mrb[8].mxu1 %vm853_vm3, %v1074_v25 }
 0x50e   : > { %1953 = vmatprep.mubr.msk.bf16.mxu1 %vm2188_vm1, %v2187_v31 }
 0x511   : > { %1948 = vmatmul.mubr.msk.bf16.vlgmr.msra.gmra.mrb[12].mxu0 %vm853_vm3, %v1124_v26 }
 0x512   : > { %1959 = vmatprep.mubr.msk.bf16.mxu0 %vm2188_vm1, %v2187_v31 }
 0x5d8   : > { %v1017_v27 = vpop.f32.mrb[4].mxu1 }
 0x5d9   : > { %1071 = vst.msk [vmem:[#allocation2] sm:$0xff] %vm853_vm3, %v1017_v27  ;;  %v1931_v28 = vpop.f32.mrb[5].mxu1 }
 0x5da   : > { %v1020_v29 = vpop.f32.mrb[6].mxu1 }
 0x5db   : > { %v1932_v30 = vpop.f32.mrb[7].mxu1 }
 0x5dc   : > { %v1065_v32 = vpop.f32.mrb[8].mxu0 }
 0x5dd   : > { %1072 = vst.msk [vmem:[#allocation2 + $0x8] sm:$0xff] %vm853_vm3, %v1065_v32  ;;  %v1937_v35 = vpop.f32.mrb[9].mxu0 }
 0x5de   : > { %v1068_v36 = vpop.f32.mrb[10].mxu0 }
 0x5df   : > { %v1938_v37 = vpop.f32.mrb[11].mxu0 }
 0x5e0   : > { %v1117_v38 = vpop.f32.mrb[8].mxu1 }
 0x5e1   : > { %v1118_v39 = vadd.f32 %v2481_v49, %v1117_v38  ;;  %v1943_v40 = vpop.f32.mrb[9].mxu1 }
 0x5e2   : > { %v1120_v42 = vpop.f32.mrb[10].mxu1 }
 0x5e3   : > { %v1944_v43 = vpop.f32.mrb[11].mxu1  ;;  %v1173_v45 = vsel %vm949_vm4, %v1118_v39, -inf }
 0x5e4   : > { %1174 = vmax.xlane.f32.xlu1 %v1173_v45  ;;  %v1167_v46 = vpop.f32.mrb[12].mxu0 }
 0x5e5   : > { %v1168_v47 = vadd.f32 %v2487_v54, %v1167_v46  ;;  %v1949_v48 = vpop.f32.mrb[13].mxu0 }
 0x5e6   : > { %v1170_v50 = vpop.f32.mrb[14].mxu0  ;;  %v2048_v48 = vld [vmem:[%s2401_s4 + $0x8] sm:$0xff]  }
 0x5e7   : > { %v1950_v51 = vpop.f32.mrb[15].mxu0  ;;  %v1176_v52 = vsel %vm949_vm4, %v1168_v47, -inf }
 0x5e8   : > { %1177 = vmax.xlane.f32.xlu0 %v1176_v52 }
 0x5fe   : > { %1245 = vrot.lane.b32.xlu0 %v2463_v44, %s2193_s20 }
 0x671   : > { %v1175_v53 = vpop.xlane.xlu1 %1174 }
 0x672   : > { %v1179_v49 = vsub.f32 %v1118_v39, %v1175_v53 }
 0x674   : > { %v1181_v55 = vmul.f32 1.442695, %v1179_v49 }
 0x675   : > { %v1178_v56 = vpop.xlane.xlu0 %1177 }
 0x676   : > { %2061 = vpow2.f32 %v1181_v55  ;;  %v1180_v57 = vsub.f32 %v1168_v47, %v1178_v56 }
 0x678   : > { %v1183_v58 = vmul.f32 1.442695, %v1180_v57 }
 0x679   : > { %v1246_v59 = vpop.permute.xlu0 %1245 }
 0x67a   : > { %2063 = vpow2.f32 %v1183_v58  ;;  %v1251_v54 = vsel %vm979_vm5, %v1246_v59, 0 }
 0x67b   : > { %1958 = vmatpush3.bf16.msra.mxu0 %v1251_v54 }
 0x67c   : > { %1971 = vmatprep.subr.bf16.mxu0 %v2187_v31 }
 0x680   : > { %v2062_v60 = vpop.eup %2061 }
 0x681   : > { %v1185_v61 = vsel %vm949_vm4, %v2062_v60, 0.0 }
 0x682   : > { %1186 = vadd.xlane.f32.xlu1 %v1185_v61  ;;  %v1856_v61 = vld [vmem:[%s2682_s19] ss:$0 sm:$0xff] }
 0x684   : > { %v2064_v62 = vpop.eup %2063 }
 0x685   : > { %v1188_v44 = vsel %vm949_vm4, %v2064_v62, 0.0 }
 0x686   : > { %1189 = vadd.xlane.f32.xlu1 %v1188_v44 }
 0x697   : > { %1197 = vrot.lane.b32.xlu1 %v2460_v41, %s2193_s20 }
 0x70f   : > { %v1187_v63 = vpop.xlane.xlu1 %1186 }
 0x710   : > { %2065 = vrcp.f32 %v1187_v63 }
 0x713   : > { %v1190_v0 = vpop.xlane.xlu1 %1189 }
 0x714   : > { %2067 = vrcp.f32 %v1190_v0 }
 0x717   : > { %v1198_v1 = vpop.permute.xlu1 %1197 }
 0x718   : > { %v1203_v2 = vsel %vm979_vm5, %v1198_v1, 0  ;;  %v2049_v1 = vld [vmem:[%s2411_s1] sm:$0xff]  }
 0x719   : > { %1952 = vmatpush3.bf16.msra.mxu1 %v1203_v2  ;;  %v2050_v2 = vld [vmem:[%s2411_s1 + $0x8] sm:$0xff]  }
 0x71a   : > { %v2066_v3 = vpop.eup %2065  ;;  %1963 = vmatprep.subr.bf16.mxu1 %v2187_v31 }
 0x71b   : > { %v1193_v4 = vmul.f32 %v2066_v3, %v2062_v60  ;;  %v2051_v3 = vld [vmem:[%s2411_s1 + $0x10] sm:$0xff]  }
 0x71d   : > { %v1195_v5 = vpack.c.bf16 %v1193_v4, %v1193_v4  ;;  %v2052_v4 = vld [vmem:[%s2411_s1 + $0x18] sm:$0xff]  }
 0x71e   : > { %v2068_v6 = vpop.eup %2067 }
 0x71f   : > { %v1194_v7 = vmul.f32 %v2068_v6, %v2064_v62  ;;  %1954 = vmatmul.mubr.msk.bf16.vlgmr.msra.gmra.mrb[12].mxu1 %vm949_vm4, %v1195_v5  ;;  %v1857_v5 = vld [vmem:[%s693_s6] ss:$0 sm:$0xff] }
 0x720   : > { %1967 = vmatprep.mubr.msk.bf16.mxu1 %vm2188_vm1, %v2187_v31  ;;  %1964 = vmatpush3.bf16.msra.mxu1 %v2045_v8 }
 0x721   : > { %v1196_v41 = vpack.c.bf16 %v1194_v7, %v1194_v7  ;;  %1965 = vmatprep.subr.bf16.mxu1 %v2187_v31 }
 0x723   : > { %1960 = vmatmul.mubr.msk.bf16.vlgmr.msra.gmra.mrb[16].mxu0 %vm949_vm4, %v1196_v41 }
 0x724   : > { %1975 = vmatprep.mubr.msk.bf16.mxu0 %vm2188_vm1, %v2187_v31  ;;  %1966 = vmatpush3.bf16.msra.mxu1 %v2046_v9 }
 0x725   : > { %1979 = vmatprep.subr.bf16.mxu1 %v2187_v31 }
 0x7f2   : > { %v1239_v10 = vpop.f32.mrb[12].mxu1 }
 0x7f3   : > { %1295 = vrot.lane.b32.xlu1 %v1239_v10, %s2194_s24  ;;  %v1955_v11 = vpop.f32.mrb[13].mxu1 }
 0x7f4   : > { %v1242_v12 = vpop.f32.mrb[14].mxu1 }
 0x7f5   : > { %v1956_v13 = vpop.f32.mrb[15].mxu1 }
 0x7f6   : > { %v1287_v14 = vpop.f32.mrb[16].mxu0 }
 0x7f7   : > { %1297 = vrot.lane.b32.xlu1 %v1287_v14, %s2194_s24  ;;  %v1961_v15 = vpop.f32.mrb[17].mxu0 }
 0x7f8   : > { %v1290_v16 = vpop.f32.mrb[18].mxu0 }
 0x7f9   : > { %v1962_v17 = vpop.f32.mrb[19].mxu0 }
 0x865   : > { %v1296_v18 = vpop.permute.xlu1 %1295 }
 0x866   : > { %1302 = vst.msk [vmem:[#allocation2] sm:$0xff] %vm1301_vm6, %v1296_v18 }
 0x869   : > { %v1298_v19 = vpop.permute.xlu1 %1297 }
 0x86a   : > { %1303 = vst.msk [vmem:[#allocation2 + $0x8] sm:$0xff] %vm1301_vm6, %v1298_v19 }
 0x86d   : > { %v1304_v20 = vld [vmem:[#allocation2] sm:$0xff] }
 0x871   : > { %v1305_v21 = vld [vmem:[#allocation2 + $0x8] sm:$0xff] }
 0x872   : > { %v1306_v22 = vpack.c.bf16 %v1305_v21, %v1304_v20 }
 0x874   : > { %1968 = vmatmul.mubr.msk.bf16.vlgmr.msra.gmra.mrb[16].mxu1 %vm789_vm2, %v1306_v22 }
 0x875   : > { %1987 = vmatprep.mubr.msk.bf16.mxu1 %vm2188_vm1, %v2187_v31  ;;  %1980 = vmatpush3.bf16.msra.mxu1 %v2049_v1 }
 0x876   : > { %1981 = vmatprep.subr.bf16.mxu1 %v2187_v31 }
 0x879   : > { %1982 = vmatpush3.bf16.msra.mxu1 %v2050_v2 }
 0x87a   : > { %1983 = vmatprep.subr.bf16.mxu1 %v2187_v31 }
 0x87d   : > { %1984 = vmatpush3.bf16.msra.mxu1 %v2051_v3 }
 0x87e   : > { %1985 = vmatprep.subr.bf16.mxu1 %v2187_v31 }
 0x881   : > { %1986 = vmatpush3.bf16.msra.mxu1 %v2052_v4 }
 0x947   : > { %v1367_v24 = vpop.f32.mrb[16].mxu1 }
 0x948   : > { %v1368_v25 = vadd.f32 %v1851_v23, %v1367_v24  ;;  %v1969_v26 = vpop.f32.mrb[17].mxu1 }
 0x949   : > { %v1370_v27 = vpop.f32.mrb[18].mxu1 }
 0x94a   : > { %v1371_v28 = vadd.f32 %v1851_v23, %v1370_v27  ;;  %v1970_v29 = vpop.f32.mrb[19].mxu1  ;;  %v1374_v30 = vadd.f32 %v1368_v25, %v2442_v33 }
 0x94b   : > { %v1861_v29 = vld [vmem:[%s701_s27] ss:$0 sm:$0xff] }
 0x94c   : > { %v1378_v32 = vsel %vm789_vm2, %v1374_v30, 0.0  ;;  %v1375_v35 = vadd.f32 %v1371_v28, %v2444_v34  ;;  %v2047_v34 = vld [vmem:[%s2401_s4] sm:$0xff]   ;;  %s2681_s4 = scalar_lea.vmem %s2639_s8, %s2369_s28 }
 0x94d   : > { %1379 = vadd.xlane.f32.xlu0 %v1378_v32  ;;  %1972 = vmatpush3.bf16.msra.mxu0 %v2047_v34  ;;  %v1855_v58 = vld [vmem:[%s2681_s4] ss:$0 sm:$0xff] }
 0x94e   : > { %v1381_v36 = vsel %vm789_vm2, %v1375_v35, 0.0  ;;  %1973 = vmatprep.subr.bf16.mxu0 %v2187_v31 }
 0x94f   : > { %1382 = vadd.xlane.f32.xlu1 %v1381_v36 }
 0x951   : > { %1974 = vmatpush3.bf16.msra.mxu0 %v2048_v48 }
 0x9da   : > { %v1380_v37 = vpop.xlane.xlu0 %1379 }
 0x9db   : > { %v1385_v38 = vmul.f32 0.03125, %v1380_v37 }
 0x9dc   : > { %v1383_v39 = vpop.xlane.xlu1 %1382 }
 0x9dd   : > { %v1387_v40 = vsub.f32 %v1374_v30, %v1385_v38  ;;  %v1386_v42 = vmul.f32 0.03125, %v1383_v39 }
 0x9df   : > { %v1388_v43 = vsub.f32 %v1375_v35, %v1386_v42  ;;  %v1389_v45 = vmul.f32 %v1387_v40, %v1387_v40 }
 0x9e1   : > { %v1391_v46 = vsel %vm789_vm2, %v1389_v45, 0.0  ;;  %v1390_v33 = vmul.f32 %v1388_v43, %v1388_v43 }
 0x9e2   : > { %1392 = vadd.xlane.f32.xlu0 %v1391_v46 }
 0x9e3   : > { %v1394_v47 = vsel %vm789_vm2, %v1390_v33, 0.0 }
 0x9e6   : > { %1395 = vadd.xlane.f32.xlu0 %v1394_v47 }
 0xa6f   : > { %v1393_v50 = vpop.xlane.xlu0 %1392 }
 0xa70   : > { %v1397_v51 = vmul.f32 0.03125, %v1393_v50 }
 0xa72   : > { %v1399_v52 = vadd.f32 1e-12, %v1397_v51 }
 0xa73   : > { %v1396_v53 = vpop.xlane.xlu0 %1395 }
 0xa74   : > { %2069 = vrsqrt.f32 %v1399_v52  ;;  %v1398_v49 = vmul.f32 0.03125, %v1396_v53 }
 0xa76   : > { %v1400_v55 = vadd.f32 1e-12, %v1398_v49 }
 0xa78   : > { %2071 = vrsqrt.f32 %v1400_v55 }
 0xa7e   : > { %v2070_v56 = vpop.eup %2069 }
 0xa7f   : > { %v1403_v57 = vmul.f32 %v2070_v56, %v1387_v40 }
 0xa81   : > { %v1411_v54 = vmul.f32 %v1855_v58, %v1403_v57 }
 0xa82   : > { %v2072_v59 = vpop.eup %2071 }
 0xa83   : > { %v1404_v60 = vmul.f32 %v2072_v59, %v1388_v43  ;;  %v1419_v44 = vadd.f32 %v1856_v61, %v1411_v54 }
 0xa85   : > { %v1412_v62 = vmul.f32 %v1855_v58, %v1404_v60  ;;  %v1867_v60 = vld [vmem:[%s704_s17] ss:$0 sm:$0xff]  ;;  %s2137_s17 = scalar_lea.vmem %s1647_s25, 256 }
 0xa86   : > { %p2138_p11 = scmp.ne.s32.totalorder %s1647_s25, %s2137_s17  ;;  %p2145_p1 = scmp.lt.s32.totalorder %s2137_s17, %s2137_s17 }
 0xa87   : > { %v1420_v63 = vadd.f32 %v1856_v61, %v1412_v62 }
 0xa88   : > { %p2139_p12 = pnand %p2138_p11, %p2014_p10  ;;  %p2146_p5 = por %p2145_p1, %p2144_p0 }
 0xa89   : > { %v1421_v0 = vpack.c.bf16 %v1420_v63, %v1419_v44 }
 0xa8a   : > { %p2140_p13 = pneg %p2139_p12 }
 0xa8b   : > { %1976 = vmatmul.mubr.msk.bf16.vlgmr.msra.gmra.mrb[20].mxu0 %vm789_vm2, %v1421_v0 }
 0xa8c   : > { %p2147_p7 = pnand %p2146_p5, %p2140_p13 }
 0xb5e   : > { %v1482_v6 = vpop.f32.mrb[20].mxu0 }
 0xb5f   : > { %v1483_v7 = vadd.f32 %v1857_v5, %v1482_v6  ;;  %v1977_v41 = vpop.f32.mrb[21].mxu0 }
 0xb60   : > { %v1485_v8 = vpop.f32.mrb[22].mxu0 }
 0xb61   : > { %v1491_v9 = vmul.f32 0.044715, %v1483_v7  ;;  %v1486_v10 = vadd.f32 %v1857_v5, %v1485_v8  ;;  %v1978_v11 = vpop.f32.mrb[23].mxu0  ;;  %v1489_v23 = vmul.f32 0.5, %v1483_v7 }
 0xb63   : > { %v1493_v12 = vmul.f32 %v1491_v9, %v1483_v7  ;;  %v1492_v13 = vmul.f32 0.044715, %v1486_v10  ;;  %v1490_v24 = vmul.f32 0.5, %v1486_v10 }
 0xb65   : > { %v1495_v14 = vmul.f32 %v1493_v12, %v1483_v7  ;;  %v1494_v15 = vmul.f32 %v1492_v13, %v1486_v10 }
 0xb67   : > { %v1497_v16 = vadd.f32 %v1495_v14, %v1483_v7  ;;  %v1496_v17 = vmul.f32 %v1494_v15, %v1486_v10 }
 0xb69   : > { %v1499_v31 = vmul.f32 0.7978846, %v1497_v16  ;;  %v1498_v18 = vadd.f32 %v1496_v17, %v1486_v10 }
 0xb6b   : > { %2073 = vtanh.f32 %v1499_v31  ;;  %v1500_v19 = vmul.f32 0.7978846, %v1498_v18 }
 0xb6d   : > { %2075 = vtanh.f32 %v1500_v19 }
 0xb75   : > { %v2074_v20 = vpop.eup %2073 }
 0xb76   : > { %v1503_v21 = vadd.f32 1.0, %v2074_v20 }
 0xb77   : > { %v2076_v22 = vpop.eup %2075 }
 0xb78   : > { %v1504_v25 = vadd.f32 1.0, %v2076_v22  ;;  %v1505_v26 = vmul.f32 %v1503_v21, %v1489_v23 }
 0xb7a   : > { %v1506_v27 = vmul.f32 %v1504_v25, %v1490_v24 }
 0xb7c   : > { %v1507_v28 = vpack.c.bf16 %v1506_v27, %v1505_v26 }
 0xb7e   : > { %1988 = vmatmul.mubr.msk.bf16.vlgmr.msra.gmra.mrb[20].mxu1 %vm1547_vm7, %v1507_v28 }
 0xc51   : > { %v1585_v30 = vpop.f32.mrb[20].mxu1 }
 0xc52   : > { %v1586_v32 = vadd.f32 %v1861_v29, %v1585_v30  ;;  %v1989_v35 = vpop.f32.mrb[21].mxu1 }
 0xc53   : > { %v1588_v36 = vpop.f32.mrb[22].mxu1 }
 0xc54   : > { %v1589_v37 = vadd.f32 %v1861_v29, %v1588_v36  ;;  %v1990_v38 = vpop.f32.mrb[23].mxu1  ;;  %v1592_v39 = vadd.f32 %v1586_v32, %v1419_v44  ;;  %v1868_v44 = vld [vmem:[%s707_s3] ss:$0 sm:$0xff] }
 0xc56   : > { %v1596_v40 = vsel %vm789_vm2, %v1592_v39, 0.0  ;;  %v1593_v42 = vadd.f32 %v1589_v37, %v1420_v63 }
 0xc57   : > { %1597 = vadd.xlane.f32.xlu1 %v1596_v40 }
 0xc58   : > { %v1599_v43 = vsel %vm789_vm2, %v1593_v42, 0.0 }
 0xc59   : > { %1600 = vadd.xlane.f32.xlu0 %v1599_v43 }
 0xce4   : > { %v1598_v45 = vpop.xlane.xlu1 %1597 }
 0xce5   : > { %v1602_v46 = vmul.f32 0.03125, %v1598_v45 }
 0xce6   : > { %v1601_v33 = vpop.xlane.xlu0 %1600 }
 0xce7   : > { %v1604_v47 = vsub.f32 %v1592_v39, %v1602_v46  ;;  %v1603_v34 = vmul.f32 0.03125, %v1601_v33 }
 0xce9   : > { %v1605_v48 = vsub.f32 %v1593_v42, %v1603_v34  ;;  %v1606_v50 = vmul.f32 %v1604_v47, %v1604_v47 }
 0xceb   : > { %v1608_v51 = vsel %vm789_vm2, %v1606_v50, 0.0  ;;  %v1607_v52 = vmul.f32 %v1605_v48, %v1605_v48 }
 0xcec   : > { %1609 = vadd.xlane.f32.xlu1 %v1608_v51 }
 0xced   : > { %v1611_v53 = vsel %vm789_vm2, %v1607_v52, 0.0 }
 0xcee   : > { %1612 = vadd.xlane.f32.xlu0 %v1611_v53 }
 0xd79   : > { %v1610_v49 = vpop.xlane.xlu1 %1609 }
 0xd7a   : > { %v1614_v55 = vmul.f32 0.03125, %v1610_v49 }
 0xd7b   : > { %v1613_v56 = vpop.xlane.xlu0 %1612 }
 0xd7c   : > { %v1616_v57 = vadd.f32 1e-12, %v1614_v55  ;;  %v1615_v58 = vmul.f32 0.03125, %v1613_v56 }
 0xd7e   : > { %2077 = vrsqrt.f32 %v1616_v57  ;;  %v1617_v59 = vadd.f32 1e-12, %v1615_v58 }
 0xd80   : > { %2079 = vrsqrt.f32 %v1617_v59 }
 0xd88   : > { %v2078_v54 = vpop.eup %2077 }
 0xd89   : > { %v1620_v61 = vmul.f32 %v2078_v54, %v1604_v47 }
 0xd8a   : > { %v2080_v62 = vpop.eup %2079 }
 0xd8b   : > { %v1628_v63 = vmul.f32 %v1867_v60, %v1620_v61  ;;  %v1621_v0 = vmul.f32 %v2080_v62, %v1605_v48 }
 0xd8d   : > { %v1629_v1 = vmul.f32 %v1867_v60, %v1621_v0  ;;  %v1636_v2 = vadd.f32 %v1868_v44, %v1628_v63 }
 0xd8f   : > { %v1637_v3 = vadd.f32 %v1868_v44, %v1629_v1  ;;  %1638 = vst.msk [vmem:[#allocation8] sm:$0xff] %vm789_vm2, %v1636_v2 }
 0xd91   : > { %1639 = vst.msk [vmem:[#allocation8 + $0x8] sm:$0xff] %vm789_vm2, %v1637_v3 }
 0xd92   : > { %2150 = shalt.err (!%p2147_p7)
}
 0xd93   : > { %s2683_s18 = sld [smem:[#allocation19_spill]] }
 0xd99   : > { %s2151_s4 = scalar_lea.hbm %s2683_s18, 256 }
 0xd9a   : > { %p2152_p8 = scmp.ne.s32.totalorder %s2683_s18, %s2151_s4  ;;  %p2157_p4 = scmp.lt.u32.totalorder %s2151_s4, %s2683_s18 }
 0xd9c   : > { %p2153_p2 = pnand %p2152_p8, %p2014_p10 }
 0xd9e   : > { %p2154_p3 = pneg %p2153_p2 }
 0xda0   : > { %p2159_p9 = pnand %p2157_p4, %p2154_p3 }
 0xda2   : > { %2162 = shalt.err (!%p2159_p9)
}
 0xda3   : > { %s2196_s23 = smov 128   ;;  %s2197_s6 = smov 8  }
 0xda4   : > { %2000 = dma.vmem_to_hbm [thread:$0]  (%p2014_p10), %s1647_s25, 256, %s2683_s18, [#allocation5], %s2196_s23, %s2196_s23, %s2197_s6  }
 0xda5   : > { %2176 = dma.done.wait (%p2014_p10), [#allocation5], 256  }
 0xda6   : > { %2178 = vsyncadd (%p2014_p10), [#allocation5], 4294967040 }
 0xda7 PF: > { %s2684_s24 = sld [smem:[#allocation12_spill]] }
 0xdad   : > { %s29_s21 = sadd.s32 1, %s2684_s24  }
 0xdae   : > { %p26_p6 = scmp.ge.s32.totalorder %s29_s21, 4  }
 0xdb0   :  { %28 = sbr.rel (!%p26_p6) target bundleno = 10 (0xa), region = 157 }
 0xdb7   :  { %1662 = vsyncpa [#allocation4], 1 }
 0xdb8   :  { %1664 = vsyncpa [#allocation4 + $0x1], 1 }
 0xdb9   :  { %1665 = vsyncpa [#allocation7], 1 }
 0xdba   :  { %1666 = vsyncpa [#allocation5], 1 }
 0xdbb   :  { %1668 = vsyncpa [#allocation5 + $0x1], 1 }

</bundles_post_ra>
